<compile_context>
chip_gen: v5e
topology: v5e:2x2
jax: 0.10.0
libtpu: 0.0.40
codegen_flags: <defaults>
</compile_context>

<pallas_src>
import jax
import jax.numpy as jnp
from jax import lax
from jax.experimental import pallas as pl
from jax.experimental.pallas import tpu as pltpu


def lstm_classify_kernel(ids_ref, len_ref, table_ref, whh_ref, wc_ref, bc_ref,
                         out_ref, gx_ref):
    """Fused embedding gather + layer-0 LSTM recurrence + classify + softmax.

    ids_ref  : (T*B, 1)   i32  time-major flattened token ids
    len_ref  : (B, 1)     i32  sequence lengths (pack_padded state freeze)
    table_ref: (V, 4H)    f32  pre-projected table emb @ W_ih^T + (b_ih+b_hh)
    whh_ref  : (H, 4H)    f32  hidden->gates weights (pre-transposed)
    wc_ref   : (H, C)     f32  classifier weights (pre-transposed)
    bc_ref   : (1, C)     f32  classifier bias
    out_ref  : (B, C)     f32  softmax probabilities
    gx_ref   : (T, B, 4H) f32  VMEM scratch, per-step gate inputs
    """
    T, B, fourH = gx_ref.shape
    H = whh_ref.shape[0]
    V = table_ref.shape[0]

    # Fused embedding lookup: one-hot(ids) @ proj_table on the MXU.
    ids = ids_ref[...]                                           # (T*B, 1)
    iota_v = lax.broadcasted_iota(jnp.int32, (T * B, V), 1)      # (T*B, V)
    onehot = (ids == iota_v).astype(jnp.float32)
    gx_ref[...] = jnp.dot(onehot, table_ref[...],
                          preferred_element_type=jnp.float32
                          ).reshape(T, B, fourH)

    lens = len_ref[...]                                          # (B, 1)
    # Lane mask (hoisted): g-gate lanes get tanh, i/f/o lanes get sigmoid.
    lane = lax.broadcasted_iota(jnp.int32, (B, fourH), 1)
    is_g = jnp.logical_and(lane >= 2 * H, lane < 3 * H)

    def step(t, carry):
        h, c = carry                          # f32 (B, H), vreg-resident
        # Only the recurrent matmul sits on the sequential critical path.
        gates = gx_ref[t] + jnp.dot(h, whh_ref[...],
                                    preferred_element_type=jnp.float32)
        act = jnp.where(is_g, jnp.tanh(gates), jax.nn.sigmoid(gates))
        i_g = act[:, 0 * H:1 * H]
        f_g = act[:, 1 * H:2 * H]
        g_g = act[:, 2 * H:3 * H]
        o_g = act[:, 3 * H:4 * H]
        c_new = f_g * c + i_g * g_g
        h_new = o_g * jnp.tanh(c_new)
        # pack_padded_sequence: state stops updating once t >= seq_len[b]
        mask = t < lens                       # (B, 1) bool
        return jnp.where(mask, h_new, h), jnp.where(mask, c_new, c)

    h0 = jnp.zeros((B, H), jnp.float32)
    c0 = jnp.zeros((B, H), jnp.float32)
    h, _ = lax.fori_loop(0, T, step, (h0, c0), unroll=True)

    # classify(hidden[0]) followed by an exact softmax over the class dim.
    logits = jnp.dot(h, wc_ref[...],
                     preferred_element_type=jnp.float32) + bc_ref[...]
    logits = logits - jnp.max(logits, axis=-1, keepdims=True)
    e = jnp.exp(logits)
    out_ref[...] = e / jnp.sum(e, axis=-1, keepdims=True)


@jax.jit
def my_model_forward(input_ids, seq_len, kparams):
    """input_ids: (B, T) int32, seq_len: (B,) int32 (sorted descending)."""
    proj_table = kparams["proj_table"]        # (V, 4H) f32, biases folded in
    whh = kparams["whh"]                      # (H, 4H) f32
    wc = kparams["wc"]                        # (H, C)  f32
    bc = kparams["bc"]                        # (1, C)  f32

    B, T = input_ids.shape
    H = whh.shape[0]
    C = wc.shape[1]

    # Time-major flattened id column (tiny metadata op; the gather itself is
    # done inside the kernel).
    ids_col = jnp.transpose(input_ids).reshape(T * B, 1).astype(jnp.int32)
    len2d = seq_len.astype(jnp.int32).reshape(B, 1)

    vmem = pl.BlockSpec(memory_space=pltpu.MemorySpace.VMEM)
    return pl.pallas_call(
        lstm_classify_kernel,
        out_shape=jax.ShapeDtypeStruct((B, C), jnp.float32),
        in_specs=[vmem] * 6,
        out_specs=vmem,
        scratch_shapes=[pltpu.VMEM((T, B, 4 * H), jnp.float32)],
    )(ids_col, len2d, proj_table, whh, wc, bc)


def xavier_uniform(key, shape):
    # torch.nn.init.xavier_uniform_ on a (out, in) matrix
    fan_out, fan_in = shape
    bound = (6.0 / (fan_in + fan_out)) ** 0.5
    return jax.random.uniform(key, shape, jnp.float32, -bound, bound)


def init_params(key, hidden_size, input_size, num_class, num_embeddings):
    k_emb, k_ih, k_hh, k_cls = jax.random.split(key, 4)
    H, D = hidden_size, input_size
    # PyTorch shapes: weight_ih_l0 (4H, D), weight_hh_l0 (4H, H),
    # classify.weight (C, H), embedding.weight (V, D); all biases -> 0.
    return {
        "embedding": xavier_uniform(k_emb, (num_embeddings, D)),
        "w_ih": xavier_uniform(k_ih, (4 * H, D)),
        "w_hh": xavier_uniform(k_hh, (4 * H, H)),
        "w_c": xavier_uniform(k_cls, (num_class, H)),
        "b_ih": jnp.zeros((4 * H,), jnp.float32),
        "b_hh": jnp.zeros((4 * H,), jnp.float32),
        "b_c": jnp.zeros((num_class,), jnp.float32),
    }


def prepare_kernel_params(params):
    """One-time (per-parameter-set) preprocessing for the kernel."""
    # NOTE: when importing real PyTorch weights the two LSTM bias vectors
    # (b_ih_l0 + b_hh_l0) MUST be summed here — folding them into the
    # projected embedding table is exact because the lookup is a row-select.
    bias = (params["b_ih"] + params["b_hh"]).reshape(1, -1)          # (1, 4H)
    proj_table = params["embedding"] @ jnp.transpose(params["w_ih"]) + bias
    return {
        "proj_table": proj_table.astype(jnp.float32),                # (V, 4H)
        "whh": jnp.transpose(params["w_hh"]).astype(jnp.float32),    # (H, 4H)
        "wc": jnp.transpose(params["w_c"]).astype(jnp.float32),      # (H, C)
        "bc": params["b_c"].reshape(1, -1).astype(jnp.float32),      # (1, C)
    }


def reference_forward(input_ids, seq_len, kparams):
    """Pure-JAX reference with identical semantics (for a correctness check)."""
    proj_table = kparams["proj_table"]
    whh, wc, bc = kparams["whh"], kparams["wc"], kparams["bc"]
    B, T = input_ids.shape
    H = whh.shape[0]
    gx = proj_table[jnp.transpose(input_ids)]            # (T, B, 4H)
    h = jnp.zeros((B, H), jnp.float32)
    c = jnp.zeros((B, H), jnp.float32)
    lens = seq_len.astype(jnp.int32).reshape(B, 1)
    for t in range(T):
        gates = gx[t] + h @ whh
        i = jax.nn.sigmoid(gates[:, 0 * H:1 * H])
        f = jax.nn.sigmoid(gates[:, 1 * H:2 * H])
        g = jnp.tanh(gates[:, 2 * H:3 * H])
        o = jax.nn.sigmoid(gates[:, 3 * H:4 * H])
        c_new = f * c + i * g
        h_new = o * jnp.tanh(c_new)
        mask = t < lens
        h = jnp.where(mask, h_new, h)
        c = jnp.where(mask, c_new, c)
    logits = h @ wc + bc
    return jax.nn.softmax(logits, axis=-1)


if __name__ == "__main__":
    # Hyperparameters consistent with the module's __init__
    hidden_size = 32
    input_size = 32
    num_layers = 1          # only layer 0 (forward dir) affects hidden[0]
    is_bidirectional = False
    drop_out = 0.0
    num_class = 8
    num_embeddings = 64

    B, T = 8, 10

    key = jax.random.PRNGKey(0)
    k_params, k_ids = jax.random.split(key)
    params = init_params(k_params, hidden_size, input_size,
                         num_class, num_embeddings)
    kparams = prepare_kernel_params(params)

    input_ids = jax.random.randint(k_ids, (B, T), 0, num_embeddings,
                                   dtype=jnp.int32)
    # pack_padded_sequence(enforce_sorted=True) requires descending lengths
    seq_len = jnp.array([10, 8, 7, 7, 5, 4, 2, 1], dtype=jnp.int32)

    probs = my_model_forward(input_ids, seq_len, kparams)
    probs = jax.block_until_ready(probs)

    assert probs.shape == (B, num_class)
    # exact softmax -> rows sum to 1
    assert bool(jnp.allclose(jnp.sum(probs, axis=-1), 1.0, atol=1e-4))
    # match the pure-JAX reference of the same forward pass
    ref = reference_forward(input_ids, seq_len, kparams)
    assert bool(jnp.allclose(probs, ref, atol=2e-3, rtol=2e-3))
    print("KERNEL_OK")
</pallas_src>

<mosaic_0001>
module attributes {stable_mosaic.version = 11 : i64} {
  func.func @lstm_classify_kernel(%arg0: memref<80x1xi32, #tpu.memory_space<vmem>>, %arg1: memref<8x1xi32, #tpu.memory_space<vmem>>, %arg2: memref<64x128xf32, #tpu.memory_space<vmem>>, %arg3: memref<32x128xf32, #tpu.memory_space<vmem>>, %arg4: memref<32x8xf32, #tpu.memory_space<vmem>>, %arg5: memref<1x8xf32, #tpu.memory_space<vmem>>, %arg6: memref<8x8xf32, #tpu.memory_space<vmem>>, %arg7: memref<10x8x128xf32, #tpu.memory_space<vmem>>) attributes {dimension_semantics = [], scalar_prefetch = 0 : i64, scratch_operands = 1 : i64, tpu.core_type = #tpu.core_type<tc>} {
    %c0 = arith.constant 0 : index
    %c0_0 = arith.constant 0 : index
    %0 = vector.load %arg0[%c0, %c0_0] : memref<80x1xi32, #tpu.memory_space<vmem>>, vector<80x1xi32>
    %1 = tpu.iota {dimensions = array<i32: 1>} : vector<80x64xi32>
    %2 = vector.broadcast %0 : vector<80x1xi32> to vector<80x64xi32>
    %3 = arith.cmpi eq, %2, %1 : vector<80x64xi32>
    %4 = arith.extui %3 : vector<80x64xi1> to vector<80x64xi32>
    %5 = arith.sitofp %4 : vector<80x64xi32> to vector<80x64xf32>
    %c0_1 = arith.constant 0 : index
    %c0_2 = arith.constant 0 : index
    %6 = vector.load %arg2[%c0_1, %c0_2] : memref<64x128xf32, #tpu.memory_space<vmem>>, vector<64x128xf32>
    %cst = arith.constant dense<0.000000e+00> : vector<80x128xf32>
    %7 = tpu.matmul %5, %6, %cst {dimension_numbers = #tpu.dot_dimension_numbers<[1], [0], [0], [1], [0, 0, 1, 1], [], []>} : vector<80x64xf32>, vector<64x128xf32>, vector<80x128xf32> -> vector<80x128xf32>
    %8 = vector.shape_cast %7 : vector<80x128xf32> to vector<10x8x128xf32>
    %c0_3 = arith.constant 0 : index
    %c0_4 = arith.constant 0 : index
    %c0_5 = arith.constant 0 : index
    %9 = vector.load %arg7[%c0_3, %c0_4, %c0_5] : memref<10x8x128xf32, #tpu.memory_space<vmem>>, vector<10x8x128xf32>
    tpu.vector_store %arg7[%c0_3, %c0_4, %c0_5], %8 {strides = array<i32>} : memref<10x8x128xf32, #tpu.memory_space<vmem>>, vector<10x8x128xf32>,
    %c0_6 = arith.constant 0 : index
    %c0_7 = arith.constant 0 : index
    %10 = vector.load %arg1[%c0_6, %c0_7] : memref<8x1xi32, #tpu.memory_space<vmem>>, vector<8x1xi32>
    %11 = tpu.iota {dimensions = array<i32: 1>} : vector<8x128xi32>
    %c64_i32 = arith.constant 64 : i32
    %12 = vector.broadcast %c64_i32 : i32 to vector<8x128xi32>
    %13 = arith.cmpi sge, %11, %12 : vector<8x128xi32>
    %c96_i32 = arith.constant 96 : i32
    %14 = vector.broadcast %c96_i32 : i32 to vector<8x128xi32>
    %15 = arith.cmpi slt, %11, %14 : vector<8x128xi32>
    %16 = arith.andi %13, %15 : vector<8x128xi1>
    %cst_8 = arith.constant 0.000000e+00 : f32
    %17 = vector.broadcast %cst_8 : f32 to vector<8x32xf32>
    %cst_9 = arith.constant 0.000000e+00 : f32
    %18 = vector.broadcast %cst_9 : f32 to vector<8x32xf32>
    %c0_i32 = arith.constant 0 : i32
    %19 = arith.index_cast %c0_i32 : i32 to index
    %c0_10 = arith.constant 0 : index
    %c0_11 = arith.constant 0 : index
    %20 = vector.load %arg7[%19, %c0_10, %c0_11] : memref<10x8x128xf32, #tpu.memory_space<vmem>>, vector<1x8x128xf32>
    %21 = vector.shape_cast %20 : vector<1x8x128xf32> to vector<8x128xf32>
    %c0_12 = arith.constant 0 : index
    %c0_13 = arith.constant 0 : index
    %22 = vector.load %arg3[%c0_12, %c0_13] : memref<32x128xf32, #tpu.memory_space<vmem>>, vector<32x128xf32>
    %cst_14 = arith.constant dense<0.000000e+00> : vector<8x128xf32>
    %23 = tpu.matmul %17, %22, %cst_14 {dimension_numbers = #tpu.dot_dimension_numbers<[1], [0], [0], [1], [0, 0, 1, 1], [], []>} : vector<8x32xf32>, vector<32x128xf32>, vector<8x128xf32> -> vector<8x128xf32>
    %24 = arith.addf %21, %23 : vector<8x128xf32>
    %25 = math.tanh %24 : vector<8x128xf32>
    %26 = arith.negf %24 : vector<8x128xf32>
    %27 = math.exp %26 : vector<8x128xf32>
    %cst_15 = arith.constant 1.000000e+00 : f32
    %28 = vector.broadcast %cst_15 : f32 to vector<8x128xf32>
    %29 = arith.addf %28, %27 : vector<8x128xf32>
    %30 = arith.divf %28, %29 : vector<8x128xf32>
    %31 = arith.select %16, %25, %30 : vector<8x128xi1>, vector<8x128xf32>
    %32 = vector.extract_strided_slice %31 {offsets = [0, 0], sizes = [8, 32], strides = [1, 1]} : vector<8x128xf32> to vector<8x32xf32>
    %33 = vector.extract_strided_slice %31 {offsets = [0, 32], sizes = [8, 32], strides = [1, 1]} : vector<8x128xf32> to vector<8x32xf32>
    %34 = vector.extract_strided_slice %31 {offsets = [0, 64], sizes = [8, 32], strides = [1, 1]} : vector<8x128xf32> to vector<8x32xf32>
    %35 = vector.extract_strided_slice %31 {offsets = [0, 96], sizes = [8, 32], strides = [1, 1]} : vector<8x128xf32> to vector<8x32xf32>
    %36 = arith.mulf %33, %18 : vector<8x32xf32>
    %37 = arith.mulf %32, %34 : vector<8x32xf32>
    %38 = arith.addf %36, %37 : vector<8x32xf32>
    %39 = math.tanh %38 : vector<8x32xf32>
    %40 = arith.mulf %35, %39 : vector<8x32xf32>
    %41 = vector.broadcast %c0_i32 : i32 to vector<8x1xi32>
    %42 = arith.cmpi slt, %41, %10 : vector<8x1xi32>
    %43 = vector.shape_cast %42 : vector<8x1xi1> to vector<8x1xi1>
    %44 = vector.broadcast %43 : vector<8x1xi1> to vector<8x32xi1>
    %45 = arith.select %44, %40, %17 : vector<8x32xi1>, vector<8x32xf32>
    %46 = vector.shape_cast %42 : vector<8x1xi1> to vector<8x1xi1>
    %47 = vector.broadcast %46 : vector<8x1xi1> to vector<8x32xi1>
    %48 = arith.select %47, %38, %18 : vector<8x32xi1>, vector<8x32xf32>
    %c1_i32 = arith.constant 1 : i32
    %49 = arith.index_cast %c1_i32 : i32 to index
    %c0_16 = arith.constant 0 : index
    %c0_17 = arith.constant 0 : index
    %50 = vector.load %arg7[%49, %c0_16, %c0_17] : memref<10x8x128xf32, #tpu.memory_space<vmem>>, vector<1x8x128xf32>
    %51 = vector.shape_cast %50 : vector<1x8x128xf32> to vector<8x128xf32>
    %c0_18 = arith.constant 0 : index
    %c0_19 = arith.constant 0 : index
    %52 = vector.load %arg3[%c0_18, %c0_19] : memref<32x128xf32, #tpu.memory_space<vmem>>, vector<32x128xf32>
    %cst_20 = arith.constant dense<0.000000e+00> : vector<8x128xf32>
    %53 = tpu.matmul %45, %52, %cst_20 {dimension_numbers = #tpu.dot_dimension_numbers<[1], [0], [0], [1], [0, 0, 1, 1], [], []>} : vector<8x32xf32>, vector<32x128xf32>, vector<8x128xf32> -> vector<8x128xf32>
    %54 = arith.addf %51, %53 : vector<8x128xf32>
    %55 = math.tanh %54 : vector<8x128xf32>
    %56 = arith.negf %54 : vector<8x128xf32>
    %57 = math.exp %56 : vector<8x128xf32>
    %cst_21 = arith.constant 1.000000e+00 : f32
    %58 = vector.broadcast %cst_21 : f32 to vector<8x128xf32>
    %59 = arith.addf %58, %57 : vector<8x128xf32>
    %60 = arith.divf %58, %59 : vector<8x128xf32>
    %61 = arith.select %16, %55, %60 : vector<8x128xi1>, vector<8x128xf32>
    %62 = vector.extract_strided_slice %61 {offsets = [0, 0], sizes = [8, 32], strides = [1, 1]} : vector<8x128xf32> to vector<8x32xf32>
    %63 = vector.extract_strided_slice %61 {offsets = [0, 32], sizes = [8, 32], strides = [1, 1]} : vector<8x128xf32> to vector<8x32xf32>
    %64 = vector.extract_strided_slice %61 {offsets = [0, 64], sizes = [8, 32], strides = [1, 1]} : vector<8x128xf32> to vector<8x32xf32>
    %65 = vector.extract_strided_slice %61 {offsets = [0, 96], sizes = [8, 32], strides = [1, 1]} : vector<8x128xf32> to vector<8x32xf32>
    %66 = arith.mulf %63, %48 : vector<8x32xf32>
    %67 = arith.mulf %62, %64 : vector<8x32xf32>
    %68 = arith.addf %66, %67 : vector<8x32xf32>
    %69 = math.tanh %68 : vector<8x32xf32>
    %70 = arith.mulf %65, %69 : vector<8x32xf32>
    %71 = vector.broadcast %c1_i32 : i32 to vector<8x1xi32>
    %72 = arith.cmpi slt, %71, %10 : vector<8x1xi32>
    %73 = vector.shape_cast %72 : vector<8x1xi1> to vector<8x1xi1>
    %74 = vector.broadcast %73 : vector<8x1xi1> to vector<8x32xi1>
    %75 = arith.select %74, %70, %45 : vector<8x32xi1>, vector<8x32xf32>
    %76 = vector.shape_cast %72 : vector<8x1xi1> to vector<8x1xi1>
    %77 = vector.broadcast %76 : vector<8x1xi1> to vector<8x32xi1>
    %78 = arith.select %77, %68, %48 : vector<8x32xi1>, vector<8x32xf32>
    %c2_i32 = arith.constant 2 : i32
    %79 = arith.index_cast %c2_i32 : i32 to index
    %c0_22 = arith.constant 0 : index
    %c0_23 = arith.constant 0 : index
    %80 = vector.load %arg7[%79, %c0_22, %c0_23] : memref<10x8x128xf32, #tpu.memory_space<vmem>>, vector<1x8x128xf32>
    %81 = vector.shape_cast %80 : vector<1x8x128xf32> to vector<8x128xf32>
    %c0_24 = arith.constant 0 : index
    %c0_25 = arith.constant 0 : index
    %82 = vector.load %arg3[%c0_24, %c0_25] : memref<32x128xf32, #tpu.memory_space<vmem>>, vector<32x128xf32>
    %cst_26 = arith.constant dense<0.000000e+00> : vector<8x128xf32>
    %83 = tpu.matmul %75, %82, %cst_26 {dimension_numbers = #tpu.dot_dimension_numbers<[1], [0], [0], [1], [0, 0, 1, 1], [], []>} : vector<8x32xf32>, vector<32x128xf32>, vector<8x128xf32> -> vector<8x128xf32>
    %84 = arith.addf %81, %83 : vector<8x128xf32>
    %85 = math.tanh %84 : vector<8x128xf32>
    %86 = arith.negf %84 : vector<8x128xf32>
    %87 = math.exp %86 : vector<8x128xf32>
    %cst_27 = arith.constant 1.000000e+00 : f32
    %88 = vector.broadcast %cst_27 : f32 to vector<8x128xf32>
    %89 = arith.addf %88, %87 : vector<8x128xf32>
    %90 = arith.divf %88, %89 : vector<8x128xf32>
    %91 = arith.select %16, %85, %90 : vector<8x128xi1>, vector<8x128xf32>
    %92 = vector.extract_strided_slice %91 {offsets = [0, 0], sizes = [8, 32], strides = [1, 1]} : vector<8x128xf32> to vector<8x32xf32>
    %93 = vector.extract_strided_slice %91 {offsets = [0, 32], sizes = [8, 32], strides = [1, 1]} : vector<8x128xf32> to vector<8x32xf32>
    %94 = vector.extract_strided_slice %91 {offsets = [0, 64], sizes = [8, 32], strides = [1, 1]} : vector<8x128xf32> to vector<8x32xf32>
    %95 = vector.extract_strided_slice %91 {offsets = [0, 96], sizes = [8, 32], strides = [1, 1]} : vector<8x128xf32> to vector<8x32xf32>
    %96 = arith.mulf %93, %78 : vector<8x32xf32>
    %97 = arith.mulf %92, %94 : vector<8x32xf32>
    %98 = arith.addf %96, %97 : vector<8x32xf32>
    %99 = math.tanh %98 : vector<8x32xf32>
    %100 = arith.mulf %95, %99 : vector<8x32xf32>
    %101 = vector.broadcast %c2_i32 : i32 to vector<8x1xi32>
    %102 = arith.cmpi slt, %101, %10 : vector<8x1xi32>
    %103 = vector.shape_cast %102 : vector<8x1xi1> to vector<8x1xi1>
    %104 = vector.broadcast %103 : vector<8x1xi1> to vector<8x32xi1>
    %105 = arith.select %104, %100, %75 : vector<8x32xi1>, vector<8x32xf32>
    %106 = vector.shape_cast %102 : vector<8x1xi1> to vector<8x1xi1>
    %107 = vector.broadcast %106 : vector<8x1xi1> to vector<8x32xi1>
    %108 = arith.select %107, %98, %78 : vector<8x32xi1>, vector<8x32xf32>
    %c3_i32 = arith.constant 3 : i32
    %109 = arith.index_cast %c3_i32 : i32 to index
    %c0_28 = arith.constant 0 : index
    %c0_29 = arith.constant 0 : index
    %110 = vector.load %arg7[%109, %c0_28, %c0_29] : memref<10x8x128xf32, #tpu.memory_space<vmem>>, vector<1x8x128xf32>
    %111 = vector.shape_cast %110 : vector<1x8x128xf32> to vector<8x128xf32>
    %c0_30 = arith.constant 0 : index
    %c0_31 = arith.constant 0 : index
    %112 = vector.load %arg3[%c0_30, %c0_31] : memref<32x128xf32, #tpu.memory_space<vmem>>, vector<32x128xf32>
    %cst_32 = arith.constant dense<0.000000e+00> : vector<8x128xf32>
    %113 = tpu.matmul %105, %112, %cst_32 {dimension_numbers = #tpu.dot_dimension_numbers<[1], [0], [0], [1], [0, 0, 1, 1], [], []>} : vector<8x32xf32>, vector<32x128xf32>, vector<8x128xf32> -> vector<8x128xf32>
    %114 = arith.addf %111, %113 : vector<8x128xf32>
    %115 = math.tanh %114 : vector<8x128xf32>
    %116 = arith.negf %114 : vector<8x128xf32>
    %117 = math.exp %116 : vector<8x128xf32>
    %cst_33 = arith.constant 1.000000e+00 : f32
    %118 = vector.broadcast %cst_33 : f32 to vector<8x128xf32>
    %119 = arith.addf %118, %117 : vector<8x128xf32>
    %120 = arith.divf %118, %119 : vector<8x128xf32>
    %121 = arith.select %16, %115, %120 : vector<8x128xi1>, vector<8x128xf32>
    %122 = vector.extract_strided_slice %121 {offsets = [0, 0], sizes = [8, 32], strides = [1, 1]} : vector<8x128xf32> to vector<8x32xf32>
    %123 = vector.extract_strided_slice %121 {offsets = [0, 32], sizes = [8, 32], strides = [1, 1]} : vector<8x128xf32> to vector<8x32xf32>
    %124 = vector.extract_strided_slice %121 {offsets = [0, 64], sizes = [8, 32], strides = [1, 1]} : vector<8x128xf32> to vector<8x32xf32>
    %125 = vector.extract_strided_slice %121 {offsets = [0, 96], sizes = [8, 32], strides = [1, 1]} : vector<8x128xf32> to vector<8x32xf32>
    %126 = arith.mulf %123, %108 : vector<8x32xf32>
    %127 = arith.mulf %122, %124 : vector<8x32xf32>
    %128 = arith.addf %126, %127 : vector<8x32xf32>
    %129 = math.tanh %128 : vector<8x32xf32>
    %130 = arith.mulf %125, %129 : vector<8x32xf32>
    %131 = vector.broadcast %c3_i32 : i32 to vector<8x1xi32>
    %132 = arith.cmpi slt, %131, %10 : vector<8x1xi32>
    %133 = vector.shape_cast %132 : vector<8x1xi1> to vector<8x1xi1>
    %134 = vector.broadcast %133 : vector<8x1xi1> to vector<8x32xi1>
    %135 = arith.select %134, %130, %105 : vector<8x32xi1>, vector<8x32xf32>
    %136 = vector.shape_cast %132 : vector<8x1xi1> to vector<8x1xi1>
    %137 = vector.broadcast %136 : vector<8x1xi1> to vector<8x32xi1>
    %138 = arith.select %137, %128, %108 : vector<8x32xi1>, vector<8x32xf32>
    %c4_i32 = arith.constant 4 : i32
    %139 = arith.index_cast %c4_i32 : i32 to index
    %c0_34 = arith.constant 0 : index
    %c0_35 = arith.constant 0 : index
    %140 = vector.load %arg7[%139, %c0_34, %c0_35] : memref<10x8x128xf32, #tpu.memory_space<vmem>>, vector<1x8x128xf32>
    %141 = vector.shape_cast %140 : vector<1x8x128xf32> to vector<8x128xf32>
    %c0_36 = arith.constant 0 : index
    %c0_37 = arith.constant 0 : index
    %142 = vector.load %arg3[%c0_36, %c0_37] : memref<32x128xf32, #tpu.memory_space<vmem>>, vector<32x128xf32>
    %cst_38 = arith.constant dense<0.000000e+00> : vector<8x128xf32>
    %143 = tpu.matmul %135, %142, %cst_38 {dimension_numbers = #tpu.dot_dimension_numbers<[1], [0], [0], [1], [0, 0, 1, 1], [], []>} : vector<8x32xf32>, vector<32x128xf32>, vector<8x128xf32> -> vector<8x128xf32>
    %144 = arith.addf %141, %143 : vector<8x128xf32>
    %145 = math.tanh %144 : vector<8x128xf32>
    %146 = arith.negf %144 : vector<8x128xf32>
    %147 = math.exp %146 : vector<8x128xf32>
    %cst_39 = arith.constant 1.000000e+00 : f32
    %148 = vector.broadcast %cst_39 : f32 to vector<8x128xf32>
    %149 = arith.addf %148, %147 : vector<8x128xf32>
    %150 = arith.divf %148, %149 : vector<8x128xf32>
    %151 = arith.select %16, %145, %150 : vector<8x128xi1>, vector<8x128xf32>
    %152 = vector.extract_strided_slice %151 {offsets = [0, 0], sizes = [8, 32], strides = [1, 1]} : vector<8x128xf32> to vector<8x32xf32>
    %153 = vector.extract_strided_slice %151 {offsets = [0, 32], sizes = [8, 32], strides = [1, 1]} : vector<8x128xf32> to vector<8x32xf32>
    %154 = vector.extract_strided_slice %151 {offsets = [0, 64], sizes = [8, 32], strides = [1, 1]} : vector<8x128xf32> to vector<8x32xf32>
    %155 = vector.extract_strided_slice %151 {offsets = [0, 96], sizes = [8, 32], strides = [1, 1]} : vector<8x128xf32> to vector<8x32xf32>
    %156 = arith.mulf %153, %138 : vector<8x32xf32>
    %157 = arith.mulf %152, %154 : vector<8x32xf32>
    %158 = arith.addf %156, %157 : vector<8x32xf32>
    %159 = math.tanh %158 : vector<8x32xf32>
    %160 = arith.mulf %155, %159 : vector<8x32xf32>
    %161 = vector.broadcast %c4_i32 : i32 to vector<8x1xi32>
    %162 = arith.cmpi slt, %161, %10 : vector<8x1xi32>
    %163 = vector.shape_cast %162 : vector<8x1xi1> to vector<8x1xi1>
    %164 = vector.broadcast %163 : vector<8x1xi1> to vector<8x32xi1>
    %165 = arith.select %164, %160, %135 : vector<8x32xi1>, vector<8x32xf32>
    %166 = vector.shape_cast %162 : vector<8x1xi1> to vector<8x1xi1>
    %167 = vector.broadcast %166 : vector<8x1xi1> to vector<8x32xi1>
    %168 = arith.select %167, %158, %138 : vector<8x32xi1>, vector<8x32xf32>
    %c5_i32 = arith.constant 5 : i32
    %169 = arith.index_cast %c5_i32 : i32 to index
    %c0_40 = arith.constant 0 : index
    %c0_41 = arith.constant 0 : index
    %170 = vector.load %arg7[%169, %c0_40, %c0_41] : memref<10x8x128xf32, #tpu.memory_space<vmem>>, vector<1x8x128xf32>
    %171 = vector.shape_cast %170 : vector<1x8x128xf32> to vector<8x128xf32>
    %c0_42 = arith.constant 0 : index
    %c0_43 = arith.constant 0 : index
    %172 = vector.load %arg3[%c0_42, %c0_43] : memref<32x128xf32, #tpu.memory_space<vmem>>, vector<32x128xf32>
    %cst_44 = arith.constant dense<0.000000e+00> : vector<8x128xf32>
    %173 = tpu.matmul %165, %172, %cst_44 {dimension_numbers = #tpu.dot_dimension_numbers<[1], [0], [0], [1], [0, 0, 1, 1], [], []>} : vector<8x32xf32>, vector<32x128xf32>, vector<8x128xf32> -> vector<8x128xf32>
    %174 = arith.addf %171, %173 : vector<8x128xf32>
    %175 = math.tanh %174 : vector<8x128xf32>
    %176 = arith.negf %174 : vector<8x128xf32>
    %177 = math.exp %176 : vector<8x128xf32>
    %cst_45 = arith.constant 1.000000e+00 : f32
    %178 = vector.broadcast %cst_45 : f32 to vector<8x128xf32>
    %179 = arith.addf %178, %177 : vector<8x128xf32>
    %180 = arith.divf %178, %179 : vector<8x128xf32>
    %181 = arith.select %16, %175, %180 : vector<8x128xi1>, vector<8x128xf32>
    %182 = vector.extract_strided_slice %181 {offsets = [0, 0], sizes = [8, 32], strides = [1, 1]} : vector<8x128xf32> to vector<8x32xf32>
    %183 = vector.extract_strided_slice %181 {offsets = [0, 32], sizes = [8, 32], strides = [1, 1]} : vector<8x128xf32> to vector<8x32xf32>
    %184 = vector.extract_strided_slice %181 {offsets = [0, 64], sizes = [8, 32], strides = [1, 1]} : vector<8x128xf32> to vector<8x32xf32>
    %185 = vector.extract_strided_slice %181 {offsets = [0, 96], sizes = [8, 32], strides = [1, 1]} : vector<8x128xf32> to vector<8x32xf32>
    %186 = arith.mulf %183, %168 : vector<8x32xf32>
    %187 = arith.mulf %182, %184 : vector<8x32xf32>
    %188 = arith.addf %186, %187 : vector<8x32xf32>
    %189 = math.tanh %188 : vector<8x32xf32>
    %190 = arith.mulf %185, %189 : vector<8x32xf32>
    %191 = vector.broadcast %c5_i32 : i32 to vector<8x1xi32>
    %192 = arith.cmpi slt, %191, %10 : vector<8x1xi32>
    %193 = vector.shape_cast %192 : vector<8x1xi1> to vector<8x1xi1>
    %194 = vector.broadcast %193 : vector<8x1xi1> to vector<8x32xi1>
    %195 = arith.select %194, %190, %165 : vector<8x32xi1>, vector<8x32xf32>
    %196 = vector.shape_cast %192 : vector<8x1xi1> to vector<8x1xi1>
    %197 = vector.broadcast %196 : vector<8x1xi1> to vector<8x32xi1>
    %198 = arith.select %197, %188, %168 : vector<8x32xi1>, vector<8x32xf32>
    %c6_i32 = arith.constant 6 : i32
    %199 = arith.index_cast %c6_i32 : i32 to index
    %c0_46 = arith.constant 0 : index
    %c0_47 = arith.constant 0 : index
    %200 = vector.load %arg7[%199, %c0_46, %c0_47] : memref<10x8x128xf32, #tpu.memory_space<vmem>>, vector<1x8x128xf32>
    %201 = vector.shape_cast %200 : vector<1x8x128xf32> to vector<8x128xf32>
    %c0_48 = arith.constant 0 : index
    %c0_49 = arith.constant 0 : index
    %202 = vector.load %arg3[%c0_48, %c0_49] : memref<32x128xf32, #tpu.memory_space<vmem>>, vector<32x128xf32>
    %cst_50 = arith.constant dense<0.000000e+00> : vector<8x128xf32>
    %203 = tpu.matmul %195, %202, %cst_50 {dimension_numbers = #tpu.dot_dimension_numbers<[1], [0], [0], [1], [0, 0, 1, 1], [], []>} : vector<8x32xf32>, vector<32x128xf32>, vector<8x128xf32> -> vector<8x128xf32>
    %204 = arith.addf %201, %203 : vector<8x128xf32>
    %205 = math.tanh %204 : vector<8x128xf32>
    %206 = arith.negf %204 : vector<8x128xf32>
    %207 = math.exp %206 : vector<8x128xf32>
    %cst_51 = arith.constant 1.000000e+00 : f32
    %208 = vector.broadcast %cst_51 : f32 to vector<8x128xf32>
    %209 = arith.addf %208, %207 : vector<8x128xf32>
    %210 = arith.divf %208, %209 : vector<8x128xf32>
    %211 = arith.select %16, %205, %210 : vector<8x128xi1>, vector<8x128xf32>
    %212 = vector.extract_strided_slice %211 {offsets = [0, 0], sizes = [8, 32], strides = [1, 1]} : vector<8x128xf32> to vector<8x32xf32>
    %213 = vector.extract_strided_slice %211 {offsets = [0, 32], sizes = [8, 32], strides = [1, 1]} : vector<8x128xf32> to vector<8x32xf32>
    %214 = vector.extract_strided_slice %211 {offsets = [0, 64], sizes = [8, 32], strides = [1, 1]} : vector<8x128xf32> to vector<8x32xf32>
    %215 = vector.extract_strided_slice %211 {offsets = [0, 96], sizes = [8, 32], strides = [1, 1]} : vector<8x128xf32> to vector<8x32xf32>
    %216 = arith.mulf %213, %198 : vector<8x32xf32>
    %217 = arith.mulf %212, %214 : vector<8x32xf32>
    %218 = arith.addf %216, %217 : vector<8x32xf32>
    %219 = math.tanh %218 : vector<8x32xf32>
    %220 = arith.mulf %215, %219 : vector<8x32xf32>
    %221 = vector.broadcast %c6_i32 : i32 to vector<8x1xi32>
    %222 = arith.cmpi slt, %221, %10 : vector<8x1xi32>
    %223 = vector.shape_cast %222 : vector<8x1xi1> to vector<8x1xi1>
    %224 = vector.broadcast %223 : vector<8x1xi1> to vector<8x32xi1>
    %225 = arith.select %224, %220, %195 : vector<8x32xi1>, vector<8x32xf32>
    %226 = vector.shape_cast %222 : vector<8x1xi1> to vector<8x1xi1>
    %227 = vector.broadcast %226 : vector<8x1xi1> to vector<8x32xi1>
    %228 = arith.select %227, %218, %198 : vector<8x32xi1>, vector<8x32xf32>
    %c7_i32 = arith.constant 7 : i32
    %229 = arith.index_cast %c7_i32 : i32 to index
    %c0_52 = arith.constant 0 : index
    %c0_53 = arith.constant 0 : index
    %230 = vector.load %arg7[%229, %c0_52, %c0_53] : memref<10x8x128xf32, #tpu.memory_space<vmem>>, vector<1x8x128xf32>
    %231 = vector.shape_cast %230 : vector<1x8x128xf32> to vector<8x128xf32>
    %c0_54 = arith.constant 0 : index
    %c0_55 = arith.constant 0 : index
    %232 = vector.load %arg3[%c0_54, %c0_55] : memref<32x128xf32, #tpu.memory_space<vmem>>, vector<32x128xf32>
    %cst_56 = arith.constant dense<0.000000e+00> : vector<8x128xf32>
    %233 = tpu.matmul %225, %232, %cst_56 {dimension_numbers = #tpu.dot_dimension_numbers<[1], [0], [0], [1], [0, 0, 1, 1], [], []>} : vector<8x32xf32>, vector<32x128xf32>, vector<8x128xf32> -> vector<8x128xf32>
    %234 = arith.addf %231, %233 : vector<8x128xf32>
    %235 = math.tanh %234 : vector<8x128xf32>
    %236 = arith.negf %234 : vector<8x128xf32>
    %237 = math.exp %236 : vector<8x128xf32>
    %cst_57 = arith.constant 1.000000e+00 : f32
    %238 = vector.broadcast %cst_57 : f32 to vector<8x128xf32>
    %239 = arith.addf %238, %237 : vector<8x128xf32>
    %240 = arith.divf %238, %239 : vector<8x128xf32>
    %241 = arith.select %16, %235, %240 : vector<8x128xi1>, vector<8x128xf32>
    %242 = vector.extract_strided_slice %241 {offsets = [0, 0], sizes = [8, 32], strides = [1, 1]} : vector<8x128xf32> to vector<8x32xf32>
    %243 = vector.extract_strided_slice %241 {offsets = [0, 32], sizes = [8, 32], strides = [1, 1]} : vector<8x128xf32> to vector<8x32xf32>
    %244 = vector.extract_strided_slice %241 {offsets = [0, 64], sizes = [8, 32], strides = [1, 1]} : vector<8x128xf32> to vector<8x32xf32>
    %245 = vector.extract_strided_slice %241 {offsets = [0, 96], sizes = [8, 32], strides = [1, 1]} : vector<8x128xf32> to vector<8x32xf32>
    %246 = arith.mulf %243, %228 : vector<8x32xf32>
    %247 = arith.mulf %242, %244 : vector<8x32xf32>
    %248 = arith.addf %246, %247 : vector<8x32xf32>
    %249 = math.tanh %248 : vector<8x32xf32>
    %250 = arith.mulf %245, %249 : vector<8x32xf32>
    %251 = vector.broadcast %c7_i32 : i32 to vector<8x1xi32>
    %252 = arith.cmpi slt, %251, %10 : vector<8x1xi32>
    %253 = vector.shape_cast %252 : vector<8x1xi1> to vector<8x1xi1>
    %254 = vector.broadcast %253 : vector<8x1xi1> to vector<8x32xi1>
    %255 = arith.select %254, %250, %225 : vector<8x32xi1>, vector<8x32xf32>
    %256 = vector.shape_cast %252 : vector<8x1xi1> to vector<8x1xi1>
    %257 = vector.broadcast %256 : vector<8x1xi1> to vector<8x32xi1>
    %258 = arith.select %257, %248, %228 : vector<8x32xi1>, vector<8x32xf32>
    %c8_i32 = arith.constant 8 : i32
    %259 = arith.index_cast %c8_i32 : i32 to index
    %c0_58 = arith.constant 0 : index
    %c0_59 = arith.constant 0 : index
    %260 = vector.load %arg7[%259, %c0_58, %c0_59] : memref<10x8x128xf32, #tpu.memory_space<vmem>>, vector<1x8x128xf32>
    %261 = vector.shape_cast %260 : vector<1x8x128xf32> to vector<8x128xf32>
    %c0_60 = arith.constant 0 : index
    %c0_61 = arith.constant 0 : index
    %262 = vector.load %arg3[%c0_60, %c0_61] : memref<32x128xf32, #tpu.memory_space<vmem>>, vector<32x128xf32>
    %cst_62 = arith.constant dense<0.000000e+00> : vector<8x128xf32>
    %263 = tpu.matmul %255, %262, %cst_62 {dimension_numbers = #tpu.dot_dimension_numbers<[1], [0], [0], [1], [0, 0, 1, 1], [], []>} : vector<8x32xf32>, vector<32x128xf32>, vector<8x128xf32> -> vector<8x128xf32>
    %264 = arith.addf %261, %263 : vector<8x128xf32>
    %265 = math.tanh %264 : vector<8x128xf32>
    %266 = arith.negf %264 : vector<8x128xf32>
    %267 = math.exp %266 : vector<8x128xf32>
    %cst_63 = arith.constant 1.000000e+00 : f32
    %268 = vector.broadcast %cst_63 : f32 to vector<8x128xf32>
    %269 = arith.addf %268, %267 : vector<8x128xf32>
    %270 = arith.divf %268, %269 : vector<8x128xf32>
    %271 = arith.select %16, %265, %270 : vector<8x128xi1>, vector<8x128xf32>
    %272 = vector.extract_strided_slice %271 {offsets = [0, 0], sizes = [8, 32], strides = [1, 1]} : vector<8x128xf32> to vector<8x32xf32>
    %273 = vector.extract_strided_slice %271 {offsets = [0, 32], sizes = [8, 32], strides = [1, 1]} : vector<8x128xf32> to vector<8x32xf32>
    %274 = vector.extract_strided_slice %271 {offsets = [0, 64], sizes = [8, 32], strides = [1, 1]} : vector<8x128xf32> to vector<8x32xf32>
    %275 = vector.extract_strided_slice %271 {offsets = [0, 96], sizes = [8, 32], strides = [1, 1]} : vector<8x128xf32> to vector<8x32xf32>
    %276 = arith.mulf %273, %258 : vector<8x32xf32>
    %277 = arith.mulf %272, %274 : vector<8x32xf32>
    %278 = arith.addf %276, %277 : vector<8x32xf32>
    %279 = math.tanh %278 : vector<8x32xf32>
    %280 = arith.mulf %275, %279 : vector<8x32xf32>
    %281 = vector.broadcast %c8_i32 : i32 to vector<8x1xi32>
    %282 = arith.cmpi slt, %281, %10 : vector<8x1xi32>
    %283 = vector.shape_cast %282 : vector<8x1xi1> to vector<8x1xi1>
    %284 = vector.broadcast %283 : vector<8x1xi1> to vector<8x32xi1>
    %285 = arith.select %284, %280, %255 : vector<8x32xi1>, vector<8x32xf32>
    %286 = vector.shape_cast %282 : vector<8x1xi1> to vector<8x1xi1>
    %287 = vector.broadcast %286 : vector<8x1xi1> to vector<8x32xi1>
    %288 = arith.select %287, %278, %258 : vector<8x32xi1>, vector<8x32xf32>
    %c9_i32 = arith.constant 9 : i32
    %289 = arith.index_cast %c9_i32 : i32 to index
    %c0_64 = arith.constant 0 : index
    %c0_65 = arith.constant 0 : index
    %290 = vector.load %arg7[%289, %c0_64, %c0_65] : memref<10x8x128xf32, #tpu.memory_space<vmem>>, vector<1x8x128xf32>
    %291 = vector.shape_cast %290 : vector<1x8x128xf32> to vector<8x128xf32>
    %c0_66 = arith.constant 0 : index
    %c0_67 = arith.constant 0 : index
    %292 = vector.load %arg3[%c0_66, %c0_67] : memref<32x128xf32, #tpu.memory_space<vmem>>, vector<32x128xf32>
    %cst_68 = arith.constant dense<0.000000e+00> : vector<8x128xf32>
    %293 = tpu.matmul %285, %292, %cst_68 {dimension_numbers = #tpu.dot_dimension_numbers<[1], [0], [0], [1], [0, 0, 1, 1], [], []>} : vector<8x32xf32>, vector<32x128xf32>, vector<8x128xf32> -> vector<8x128xf32>
    %294 = arith.addf %291, %293 : vector<8x128xf32>
    %295 = math.tanh %294 : vector<8x128xf32>
    %296 = arith.negf %294 : vector<8x128xf32>
    %297 = math.exp %296 : vector<8x128xf32>
    %cst_69 = arith.constant 1.000000e+00 : f32
    %298 = vector.broadcast %cst_69 : f32 to vector<8x128xf32>
    %299 = arith.addf %298, %297 : vector<8x128xf32>
    %300 = arith.divf %298, %299 : vector<8x128xf32>
    %301 = arith.select %16, %295, %300 : vector<8x128xi1>, vector<8x128xf32>
    %302 = vector.extract_strided_slice %301 {offsets = [0, 0], sizes = [8, 32], strides = [1, 1]} : vector<8x128xf32> to vector<8x32xf32>
    %303 = vector.extract_strided_slice %301 {offsets = [0, 32], sizes = [8, 32], strides = [1, 1]} : vector<8x128xf32> to vector<8x32xf32>
    %304 = vector.extract_strided_slice %301 {offsets = [0, 64], sizes = [8, 32], strides = [1, 1]} : vector<8x128xf32> to vector<8x32xf32>
    %305 = vector.extract_strided_slice %301 {offsets = [0, 96], sizes = [8, 32], strides = [1, 1]} : vector<8x128xf32> to vector<8x32xf32>
    %306 = arith.mulf %303, %288 : vector<8x32xf32>
    %307 = arith.mulf %302, %304 : vector<8x32xf32>
    %308 = arith.addf %306, %307 : vector<8x32xf32>
    %309 = math.tanh %308 : vector<8x32xf32>
    %310 = arith.mulf %305, %309 : vector<8x32xf32>
    %311 = vector.broadcast %c9_i32 : i32 to vector<8x1xi32>
    %312 = arith.cmpi slt, %311, %10 : vector<8x1xi32>
    %313 = vector.shape_cast %312 : vector<8x1xi1> to vector<8x1xi1>
    %314 = vector.broadcast %313 : vector<8x1xi1> to vector<8x32xi1>
    %315 = arith.select %314, %310, %285 : vector<8x32xi1>, vector<8x32xf32>
    %316 = vector.shape_cast %312 : vector<8x1xi1> to vector<8x1xi1>
    %317 = vector.broadcast %316 : vector<8x1xi1> to vector<8x32xi1>
    %318 = arith.select %317, %308, %288 : vector<8x32xi1>, vector<8x32xf32>
    %c10_i32 = arith.constant 10 : i32
    %c0_70 = arith.constant 0 : index
    %c0_71 = arith.constant 0 : index
    %319 = vector.load %arg4[%c0_70, %c0_71] : memref<32x8xf32, #tpu.memory_space<vmem>>, vector<32x8xf32>
    %cst_72 = arith.constant dense<0.000000e+00> : vector<8x8xf32>
    %320 = tpu.matmul %315, %319, %cst_72 {dimension_numbers = #tpu.dot_dimension_numbers<[1], [0], [0], [1], [0, 0, 1, 1], [], []>} : vector<8x32xf32>, vector<32x8xf32>, vector<8x8xf32> -> vector<8x8xf32>
    %c0_73 = arith.constant 0 : index
    %c0_74 = arith.constant 0 : index
    %321 = vector.load %arg5[%c0_73, %c0_74] : memref<1x8xf32, #tpu.memory_space<vmem>>, vector<1x8xf32>
    %322 = vector.broadcast %321 : vector<1x8xf32> to vector<8x8xf32>
    %323 = arith.addf %320, %322 : vector<8x8xf32>
    %cst_75 = arith.constant dense<0xFF800000> : vector<8xf32>
    %324 = vector.multi_reduction <maximumf>, %323, %cst_75 [1] : vector<8x8xf32> to vector<8xf32>
    %325 = vector.shape_cast %324 : vector<8xf32> to vector<8x1xf32>
    %326 = vector.broadcast %325 : vector<8x1xf32> to vector<8x8xf32>
    %327 = arith.subf %323, %326 : vector<8x8xf32>
    %328 = math.exp %327 : vector<8x8xf32>
    %cst_76 = arith.constant dense<0.000000e+00> : vector<8xf32>
    %329 = vector.multi_reduction <add>, %328, %cst_76 [1] : vector<8x8xf32> to vector<8xf32>
    %330 = vector.shape_cast %329 : vector<8xf32> to vector<8x1xf32>
    %331 = vector.broadcast %330 : vector<8x1xf32> to vector<8x8xf32>
    %332 = arith.divf %328, %331 : vector<8x8xf32>
    %c0_77 = arith.constant 0 : index
    %c0_78 = arith.constant 0 : index
    %333 = vector.load %arg6[%c0_77, %c0_78] : memref<8x8xf32, #tpu.memory_space<vmem>>, vector<8x8xf32>
    tpu.vector_store %arg6[%c0_77, %c0_78], %332 {strides = array<i32>} : memref<8x8xf32, #tpu.memory_space<vmem>>, vector<8x8xf32>,
    return
  }
}

</mosaic_0001>

<bundles_post_ra>
// kernel: my_model_forward.1
= control target key start
LH: loop header
LB: loop body
LE: loop exit
PB: predicated region body
PF: predicated region fallthrough
CT: control target
= control target key end

     0   :  { %v1195_v1 = vmov 0   ;;  %s1560_s0 = inlined_call_operand.vmem [shape: s32[80,1], index: 0, kind: input, shape index: {}]   ;;  %s1561_s1 = inlined_call_operand.vmem [shape: s32[8,1], index: 1, kind: input, shape index: {}]   ;;  %s1562_s2 = inlined_call_operand.vmem [shape: f32[64,128], index: 2, kind: input, shape index: {}]   ;;  %s1563_s3 = inlined_call_operand.vmem [shape: f32[32,128], index: 3, kind: input, shape index: {}]   ;;  %s1564_s4 = inlined_call_operand.vmem [shape: f32[32,8], index: 4, kind: input, shape index: {}]   ;;  %s1565_s5 = inlined_call_operand.vmem [shape: f32[1,8], index: 5, kind: input, shape index: {}]   ;;  %s1566_s6 = inlined_call_operand.hbm [shape: f32[8,8], index: 6, kind: output, shape index: {}]  }
   0x1   :  { %v29_v0 = vld [vmem:[%s1560_s0 + $0x28] sm:$0xff]  ;;  %1081 = vset.pattern.permute.xlu0 %v1195_v1  ;;  %v103_v2 = vld [vmem:[%s1562_s2 + $0x38] sm:$0xff]  ;;  %v102_v3 = vld [vmem:[%s1562_s2 + $0x30] sm:$0xff]  ;;  %1082 = vset.pattern.permute.xlu2 %v1195_v1 }
   0x2   :  { %52 = vperm.xlu0 %1081, %v29_v0   ;;  %1052 = vmatpush.msra.mxu1 %v103_v2  ;;  %v101_v4 = vld [vmem:[%s1562_s2 + $0x28] sm:$0xff] }
   0x3   :  { %143 = vmatpush.msra.mxu0 %v103_v2  ;;  %1053 = vmatpush.msra.mxu2 %v103_v2 }
   0x4   :  { %1055 = vmatpush.msra.mxu1 %v102_v3  ;;  %1083 = vset.pattern.permute.xlu1 %v1195_v1 }
   0x5   :  { %11 = vsyncpa [#allocation4], 0  ;;  %v100_v5 = vld [vmem:[%s1562_s2 + $0x20] sm:$0xff]  ;;  %144 = vmatpush.msra.mxu0 %v102_v3  ;;  %1056 = vmatpush.msra.mxu2 %v102_v3  ;;  %v99_v7 = vld [vmem:[%s1562_s2 + $0x18] sm:$0xff]  ;;  %v34_v17 = vlaneseq  ;;  %vm104_vm0 = vcmask 523264   ;;  %v1196_v20 = vmov 0.0  }
   0x6   :  { %1058 = vmatpush.msra.mxu1 %v101_v4  ;;  %1054 = vmatpush.msra.mxu3 %v103_v2  ;;  %v24_v6 = vld [vmem:[%s1560_s0] sm:$0xff]  ;;  %v98_v8 = vld [vmem:[%s1562_s2 + $0x10] sm:$0xff]  ;;  %v97_v9 = vld [vmem:[%s1562_s2 + $0x8] sm:$0xff]  ;;  %s1198_s28 = smov 32   ;;  %vm201_vm15 = vcmask 261120  }
   0x7   :  { %145 = vmatpush.msra.mxu0 %v101_v4  ;;  %1059 = vmatpush.msra.mxu2 %v101_v4  ;;  %v30_v10 = vld [vmem:[%s1560_s0 + $0x30] sm:$0xff]  ;;  %v25_v11 = vld [vmem:[%s1560_s0 + $0x8] sm:$0xff]  ;;  %v96_v12 = vld [vmem:[%s1562_s2] sm:$0xff]  ;;  %v1306_v18 = vand.u32 127, %v34_v17 }
   0x8   :  { %1061 = vmatpush.msra.mxu1 %v100_v5  ;;  %1057 = vmatpush.msra.mxu3 %v102_v3  ;;  %v1277_v13 = vld [vmem:[%s1563_s3 + $0x18] sm:$0xff]  ;;  %v1282_v14 = vld [vmem:[%s1563_s3 + $0x10] sm:$0xff]  ;;  %v1289_v15 = vld [vmem:[%s1563_s3 + $0x8] sm:$0xff] }
   0x9   :  { %146 = vmatpush.msra.mxu0 %v100_v5  ;;  %1062 = vmatpush.msra.mxu2 %v100_v5  ;;  %v1300_v16 = vld [vmem:[%s1563_s3] sm:$0xff]  ;;  %vm193_vm5 = vcmp.ge.s32.totalorder %v1306_v18, 64  ;;  %vm194_vm6 = vcmp.lt.s32.totalorder %v1306_v18, 96  ;;  %s1197_s3 = smov 64   ;;  %v31_v50 = vld [vmem:[%s1560_s0 + $0x38] sm:$0xff] }
   0xa   :  { %37 = vperm.xlu0 %1081, %v24_v6   ;;  %1064 = vmatpush.msra.mxu1 %v99_v7  ;;  %vm1337_vm8 = vmand %vm193_vm5, %vm194_vm6  ;;  %v1354_v55 = vld [vmem:[%s1561_s1] sm:$0xff]  ;;  %v940_v41 = vld [vmem:[%s1564_s4 + $0x18] sm:$0xff] }
   0xb   :  { %147 = vmatpush.msra.mxu0 %v99_v7  ;;  %1065 = vmatpush.msra.mxu2 %v99_v7  ;;  %vm264_vm12 = vcmp.gt.s32.totalorder %v1354_v55, 0  ;;  %vm338_vm5 = vcmp.gt.s32.totalorder %v1354_v55, 1 }
   0xc   :  { %1067 = vmatpush.msra.mxu1 %v98_v8  ;;  %1060 = vmatpush.msra.mxu3 %v101_v4  ;;  %v265_v56 = vsel %vm264_vm12, 1, %v1195_v1 }
   0xd   :  { %148 = vmatpush.msra.mxu0 %v98_v8  ;;  %1068 = vmatpush.msra.mxu2 %v98_v8 }
   0xe   :  { %1070 = vmatpush.msra.mxu1 %v97_v9  ;;  %1063 = vmatpush.msra.mxu3 %v100_v5 }
   0xf   :  { %149 = vmatpush.msra.mxu0 %v97_v9  ;;  %1071 = vmatpush.msra.mxu2 %v97_v9 }
  0x10   :  { %1066 = vmatpush.msra.mxu3 %v99_v7  ;;  %1073 = vmatpush.msra.mxu1 %v96_v12 }
  0x11   :  { %150 = vmatpush.msra.mxu0 %v96_v12  ;;  %1074 = vmatpush.msra.mxu2 %v96_v12 }
  0x12   :  { %55 = vperm.xlu0 %1081, %v30_v10   ;;  %1069 = vmatpush.msra.mxu3 %v98_v8 }
  0x13   :  { %217 = vmatpush.msrb.mxu1 %v1277_v13  ;;  %291 = vmatpush.msrb.mxu2 %v1277_v13 }
  0x14   :  { %1072 = vmatpush.msra.mxu3 %v97_v9 }
  0x15   :  { %218 = vmatpush.msrb.mxu1 %v1282_v14  ;;  %292 = vmatpush.msrb.mxu2 %v1282_v14 }
  0x16   :  { %1075 = vmatpush.msra.mxu3 %v96_v12 }
  0x17   :  { %219 = vmatpush.msrb.mxu1 %v1289_v15  ;;  %293 = vmatpush.msrb.mxu2 %v1289_v15 }
  0x18   :  { %365 = vmatpush.msrb.mxu3 %v1277_v13 }
  0x19   :  { %220 = vmatpush.msrb.mxu1 %v1300_v16  ;;  %294 = vmatpush.msrb.mxu2 %v1300_v16 }
  0x1a   :  { %40 = vperm.xlu0 %1081, %v25_v11   ;;  %366 = vmatpush.msrb.mxu3 %v1282_v14 }
  0x1c   :  { %367 = vmatpush.msrb.mxu3 %v1289_v15 }
  0x1e   :  { %368 = vmatpush.msrb.mxu3 %v1300_v16 }
  0x74   :  { %v53_v19 = vpop.permute.xlu0 %52 }
  0x75   :  { %vm71_vm1 = vcmp.eq.s32.totalorder %v53_v19, %v1306_v18 }
  0x76   :  { %v1017_v21 = vsel %vm71_vm1, 1.0, %v1196_v20 }
  0x77   :  { %1027 = vmatmul.msk.f32.vlgmr.msra.gmra.mxu1 %vm104_vm0, %v1017_v21 }
  0x78   :  { %439 = vmatpush.msra.mxu1 %v1277_v13 }
  0x7a   :  { %440 = vmatpush.msra.mxu1 %v1282_v14 }
  0x7c   :  { %v38_v22 = vpop.permute.xlu0 %37  ;;  %441 = vmatpush.msra.mxu1 %v1289_v15 }
  0x7d   :  { %vm66_vm2 = vcmp.eq.s32.totalorder %v38_v22, %v1306_v18 }
  0x7e   :  { %v1012_v23 = vsel %vm66_vm2, 1.0, %v1196_v20  ;;  %442 = vmatpush.msra.mxu1 %v1300_v16 }
  0x7f   :  { %1022 = vmatmul.msk.f32.vlgmr.msra.gmra.mxu0 %vm104_vm0, %v1012_v23  ;;  %221 = vmatmul.f32.vlgmr.msrb.gmra.mxu1 %v1196_v20 }
  0x80   :  { %661 = vmatpush.msrb.mxu1 %v1277_v13 }
  0x82   :  { %662 = vmatpush.msrb.mxu1 %v1282_v14 }
  0x84   :  { %v56_v24 = vpop.permute.xlu0 %55  ;;  %663 = vmatpush.msrb.mxu1 %v1289_v15 }
  0x85   :  { %vm72_vm3 = vcmp.eq.s32.totalorder %v56_v24, %v1306_v18 }
  0x86   :  { %v1018_v25 = vsel %vm72_vm3, 1.0, %v1196_v20  ;;  %664 = vmatpush.msrb.mxu1 %v1300_v16 }
  0x87   :  { %1028 = vmatmul.msk.f32.vlgmr.msra.gmra.mxu2 %vm104_vm0, %v1018_v25 }
  0x88   :  { %513 = vmatpush.msra.mxu2 %v1277_v13 }
  0x8a   :  { %514 = vmatpush.msra.mxu2 %v1282_v14 }
  0x8c   :  { %v41_v26 = vpop.permute.xlu0 %40  ;;  %515 = vmatpush.msra.mxu2 %v1289_v15 }
  0x8d   :  { %vm67_vm4 = vcmp.eq.s32.totalorder %v41_v26, %v1306_v18 }
  0x8e   :  { %v1013_v27 = vsel %vm67_vm4, 1.0, %v1196_v20  ;;  %516 = vmatpush.msra.mxu2 %v1300_v16 }
  0x8f   :  { %1023 = vmatmul.msk.f32.gmra.mxu0 %vm104_vm0, %v1013_v27  ;;  %v339_v27 = vsel %vm338_vm5, 1, %v1195_v1 }
  0xf4   :  { %v1333_v28 = vpop.f32.mrf.mxu1 }
  0xfc   :  { %v152_v29 = vpop.f32.mrf.mxu0  ;;  %v222_v30 = vpop.f32.mrf.mxu1 }
  0xfd   :  { %v225_v31 = vadd.f32 %v222_v30, %v152_v29 }
  0xff   :  { %v1032_v32 = vmul.f32 -1.442695, %v225_v31 }
 0x101   :  { %1085 = vpow2.f32 %v1032_v32  ;;  %v26_v32 = vld [vmem:[%s1560_s0 + $0x10] sm:$0xff] }
 0x107   :  { %v1086_v33 = vpop.eup %1085 }
 0x108   :  { %v230_v34 = vadd.f32 1.0, %v1086_v33 }
 0x10a   :  { %1087 = vrcp.f32 %v230_v34  ;;  %v242_v38 = vand.u32 2147483648, %v230_v34  ;;  %v240_v40 = vand.u32 2147483647, %v230_v34  ;;  %vm236_vm9 = vweird.f32 %v230_v34  ;;  %v1372_v0 = vpop.f32.mrf.mxu2 }
 0x10b   :  { %1089 = vtanh.f32 %v225_v31  ;;  %v32_v31 = vld [vmem:[%s1560_s0 + $0x40] sm:$0xff] }
 0x10c   :  { %v243_v43 = vor.u32 1.1754944e-38, %v242_v38  ;;  %vm241_vm11 = vcmp.eq.f32.partialorder %v240_v40, 8.507059e+37  ;;  %v155_v3 = vpop.f32.mrf.mxu0  ;;  %v33_v40 = vld [vmem:[%s1560_s0 + $0x48] sm:$0xff] }
 0x110   :  { %v1088_v35 = vpop.eup %1087 }
 0x111   :  { %v232_v36 = vmul.f32 %v1088_v35, %v230_v34  ;;  %vm237_vm7 = vweird.f32 %v1088_v35  ;;  %v1090_v45 = vpop.eup %1089 }
 0x112   :  { %vm238_vm10 = vmor %vm236_vm9, %vm237_vm7 }
 0x113   :  { %v233_v37 = vsub.f32 1.0, %v232_v36 }
 0x115   :  { %v234_v39 = vmul.f32 %v1088_v35, %v233_v37 }
 0x117   :  { %v235_v42 = vadd.f32 %v1088_v35, %v234_v39 }
 0x119   :  { %v239_v44 = vsel %vm238_vm10, %v1088_v35, %v235_v42 }
 0x11a   :  { %v244_v46 = vsel %vm241_vm11, %v243_v43, %v239_v44 }
 0x11b   :  { %v246_v47 = vsel %vm1337_vm8, %v1090_v45, %v244_v46 }
 0x11c   :  { %249 = vrot.lane.b32.xlu1 %v246_v47, %s1197_s3  ;;  %v247_v51 = vmul.f32 0.0, %v246_v47 }
 0x18e   :  { %v250_v48 = vpop.permute.xlu1 %249 }
 0x18f   :  { %v252_v49 = vmul.f32 %v250_v48, %v246_v47 }
 0x191   :  { %254 = vrot.lane.b32.xlu1 %v252_v49, %s1198_s28 }
 0x199   :  { %58 = vperm.xlu1 %1083, %v31_v50  }
 0x203   :  { %v255_v52 = vpop.permute.xlu1 %254 }
 0x204   :  { %v1348_v53 = vadd.f32 %v255_v52, %v247_v51 }
 0x206   :  { %1091 = vtanh.f32 %v1348_v53 }
 0x20b   :  { %v59_v58 = vpop.permute.xlu1 %58 }
 0x20c   :  { %v1092_v54 = vpop.eup %1091  ;;  %vm73_vm13 = vcmp.eq.s32.totalorder %v59_v58, %v1306_v18 }
 0x20d   :  { %260 = vrot.lane.b32.xlu2 %v1092_v54, %s1197_s3  ;;  %v1019_v59 = vsel %vm73_vm13, 1.0, %v1196_v20 }
 0x20e   :  { %1029 = vmatmul.msk.f32.gmra.mxu2 %vm104_vm0, %v1019_v59 }
 0x215   :  { %267 = vperm.xlu2 %1082, %v265_v56  }
 0x267   :  { %v261_v57 = vpop.permute.xlu2 %260 }
 0x268   :  { %v263_v60 = vmul.f32 %v261_v57, %v246_v47 }
 0x26f   :  { %v268_v61 = vpop.permute.xlu2 %267 }
 0x270   :  { %vm269_vm14 = vcmp.eq.s32.totalorder %v268_v61, 1 }
 0x271   :  { %v1363_v62 = vsel %vm269_vm14, %v263_v60, 0.0  ;;  %v1390_v33 = vsel %vm269_vm14, %v1348_v53, 0.0 }
 0x272   :  { %275 = vrot.lane.b32.xlu2 %v1363_v62, %s1198_s28 }
 0x291   :  { %v1374_v2 = vpop.f32.mrf.mxu2 }
 0x2cc   :  { %v276_v63 = vpop.permute.xlu2 %275 }
 0x2cd   :  { %1033 = vmatmul.msk.f32.vlgmr.msrb.gmra.mxu2 %vm201_vm15, %v276_v63 }
 0x2ce   :  { %735 = vmatpush.msrb.mxu2 %v1277_v13 }
 0x2d0   :  { %736 = vmatpush.msrb.mxu2 %v1282_v14 }
 0x2d2   :  { %737 = vmatpush.msrb.mxu2 %v1289_v15 }
 0x2d4   :  { %738 = vmatpush.msrb.mxu2 %v1300_v16 }
 0x350   :  { %v296_v4 = vpop.f32.mrf.mxu2 }
 0x351   :  { %v299_v5 = vadd.f32 %v296_v4, %v155_v3 }
 0x353   :  { %v1034_v6 = vmul.f32 -1.442695, %v299_v5 }
 0x355   :  { %1093 = vpow2.f32 %v1034_v6 }
 0x35b   :  { %v1094_v7 = vpop.eup %1093 }
 0x35c   :  { %v304_v8 = vadd.f32 1.0, %v1094_v7 }
 0x35e   :  { %1095 = vrcp.f32 %v304_v8  ;;  %v316_v12 = vand.u32 2147483648, %v304_v8  ;;  %v314_v19 = vand.u32 2147483647, %v304_v8  ;;  %vm310_vm2 = vweird.f32 %v304_v8 }
 0x35f   :  { %1097 = vtanh.f32 %v299_v5 }
 0x360   :  { %v317_v22 = vor.u32 1.1754944e-38, %v316_v12  ;;  %vm315_vm4 = vcmp.eq.f32.partialorder %v314_v19, 8.507059e+37  ;;  %v27_v19 = vld [vmem:[%s1560_s0 + $0x18] sm:$0xff] }
 0x364   :  { %v1096_v9 = vpop.eup %1095 }
 0x365   :  { %v306_v10 = vmul.f32 %v1096_v9, %v304_v8  ;;  %vm311_vm1 = vweird.f32 %v1096_v9  ;;  %v1098_v24 = vpop.eup %1097 }
 0x366   :  { %vm312_vm3 = vmor %vm310_vm2, %vm311_vm1  ;;  %vm412_vm1 = vcmp.gt.s32.totalorder %v1354_v55, 2 }
 0x367   :  { %v307_v11 = vsub.f32 1.0, %v306_v10 }
 0x369   :  { %v308_v17 = vmul.f32 %v1096_v9, %v307_v11  ;;  %v413_v11 = vsel %vm412_vm1, 1, %v1195_v1  ;;  %vm560_vm1 = vcmp.gt.s32.totalorder %v1354_v55, 4 }
 0x36b   :  { %v309_v21 = vadd.f32 %v1096_v9, %v308_v17 }
 0x36d   :  { %v313_v23 = vsel %vm312_vm3, %v1096_v9, %v309_v21 }
 0x36e   :  { %v318_v25 = vsel %vm315_vm4, %v317_v22, %v313_v23 }
 0x36f   :  { %v320_v26 = vsel %vm1337_vm8, %v1098_v24, %v318_v25 }
 0x370   :  { %323 = vrot.lane.b32.xlu1 %v320_v26, %s1197_s3  ;;  %v321_v34 = vmul.f32 %v320_v26, %v1390_v33 }
 0x378   :  { %341 = vperm.xlu1 %1083, %v339_v27  }
 0x3e2   :  { %v324_v29 = vpop.permute.xlu1 %323 }
 0x3e3   :  { %v326_v30 = vmul.f32 %v324_v29, %v320_v26 }
 0x3e5   :  { %328 = vrot.lane.b32.xlu2 %v326_v30, %s1198_s28 }
 0x3ea   :  { %v342_v44 = vpop.permute.xlu1 %341 }
 0x3eb   :  { %vm343_vm9 = vcmp.eq.s32.totalorder %v342_v44, 1 }
 0x3ed   :  { %61 = vperm.xlu2 %1082, %v32_v31  }
 0x3f5   :  { %43 = vperm.xlu2 %1082, %v26_v32  }
 0x43f   :  { %v329_v35 = vpop.permute.xlu2 %328 }
 0x440   :  { %v1393_v36 = vadd.f32 %v329_v35, %v321_v34 }
 0x442   :  { %1099 = vtanh.f32 %v1393_v36  ;;  %v345_v21 = vsel %vm343_vm9, %v1393_v36, %v1390_v33 }
 0x447   :  { %v62_v37 = vpop.permute.xlu2 %61 }
 0x448   :  { %v1100_v38 = vpop.eup %1099  ;;  %vm74_vm6 = vcmp.eq.s32.totalorder %v62_v37, %v1306_v18 }
 0x449   :  { %v1020_v39 = vsel %vm74_vm6, 1.0, %v1196_v20  ;;  %334 = vrot.lane.b32.xlu0 %v1100_v38, %s1197_s3 }
 0x44a   :  { %1030 = vmatmul.msk.f32.vlgmr.msra.gmra.mxu3 %vm104_vm0, %v1020_v39 }
 0x44b   :  { %587 = vmatpush.msra.mxu3 %v1277_v13 }
 0x44d   :  { %588 = vmatpush.msra.mxu3 %v1282_v14 }
 0x44f   :  { %v44_v42 = vpop.permute.xlu2 %43  ;;  %589 = vmatpush.msra.mxu3 %v1289_v15 }
 0x450   :  { %vm68_vm7 = vcmp.eq.s32.totalorder %v44_v42, %v1306_v18 }
 0x451   :  { %v1014_v43 = vsel %vm68_vm7, 1.0, %v1196_v20  ;;  %64 = vperm.xlu0 %1081, %v33_v40   ;;  %590 = vmatpush.msra.mxu3 %v1300_v16 }
 0x452   :  { %1024 = vmatmul.msk.f32.gmra.mxu0 %vm104_vm0, %v1014_v43 }
 0x4bb   :  { %v335_v45 = vpop.permute.xlu0 %334 }
 0x4bc   :  { %v337_v46 = vmul.f32 %v335_v45, %v320_v26 }
 0x4be   :  { %v1412_v47 = vsel %vm343_vm9, %v337_v46, %v1363_v62  ;;  %vm486_vm9 = vcmp.gt.s32.totalorder %v1354_v55, 3 }
 0x4bf   :  { %349 = vrot.lane.b32.xlu1 %v1412_v47, %s1198_s28 }
 0x4c3   :  { %v65_v48 = vpop.permute.xlu0 %64 }
 0x4c4   :  { %vm75_vm10 = vcmp.eq.s32.totalorder %v65_v48, %v1306_v18 }
 0x4c5   :  { %v1021_v49 = vsel %vm75_vm10, 1.0, %v1196_v20 }
 0x4c6   :  { %1031 = vmatmul.msk.f32.gmra.mxu3 %vm104_vm0, %v1021_v49  ;;  %v487_v49 = vsel %vm486_vm9, 1, %v1195_v1 }
 0x4cd   :  { %v1424_v51 = vpop.f32.mrf.mxu3 }
 0x4cf   :  { %v158_v53 = vpop.f32.mrf.mxu0 }
 0x531   :  { %v350_v50 = vpop.permute.xlu1 %349 }
 0x532   :  { %1035 = vmatmul.msk.f32.vlgmr.msrb.gmra.mxu3 %vm201_vm15, %v350_v50 }
 0x533   :  { %809 = vmatpush.msrb.mxu3 %v1277_v13 }
 0x535   :  { %810 = vmatpush.msrb.mxu3 %v1282_v14 }
 0x537   :  { %811 = vmatpush.msrb.mxu3 %v1289_v15 }
 0x539   :  { %812 = vmatpush.msrb.mxu3 %v1300_v16 }
 0x549   :  { %v1426_v52 = vpop.f32.mrf.mxu3 }
 0x5b5   :  { %v370_v54 = vpop.f32.mrf.mxu3 }
 0x5b6   :  { %v373_v56 = vadd.f32 %v370_v54, %v158_v53 }
 0x5b8   :  { %v1036_v57 = vmul.f32 -1.442695, %v373_v56 }
 0x5ba   :  { %1101 = vpow2.f32 %v1036_v57 }
 0x5c0   :  { %v1102_v58 = vpop.eup %1101 }
 0x5c1   :  { %v378_v59 = vadd.f32 1.0, %v1102_v58 }
 0x5c3   :  { %1103 = vrcp.f32 %v378_v59  ;;  %v390_v63 = vand.u32 2147483648, %v378_v59  ;;  %v388_v4 = vand.u32 2147483647, %v378_v59  ;;  %vm384_vm12 = vweird.f32 %v378_v59 }
 0x5c4   :  { %1105 = vtanh.f32 %v373_v56 }
 0x5c5   :  { %v391_v6 = vor.u32 1.1754944e-38, %v390_v63  ;;  %vm389_vm14 = vcmp.eq.f32.partialorder %v388_v4, 8.507059e+37 }
 0x5c9   :  { %v1104_v60 = vpop.eup %1103 }
 0x5ca   :  { %v380_v61 = vmul.f32 %v1104_v60, %v378_v59  ;;  %vm385_vm11 = vweird.f32 %v1104_v60  ;;  %v1106_v8 = vpop.eup %1105 }
 0x5cb   :  { %vm386_vm13 = vmor %vm384_vm12, %vm385_vm11 }
 0x5cc   :  { %v381_v62 = vsub.f32 1.0, %v380_v61 }
 0x5ce   :  { %v382_v3 = vmul.f32 %v1104_v60, %v381_v62 }
 0x5d0   :  { %v383_v5 = vadd.f32 %v1104_v60, %v382_v3 }
 0x5d2   :  { %v387_v7 = vsel %vm386_vm13, %v1104_v60, %v383_v5  ;;  %v28_v60 = vld [vmem:[%s1560_s0 + $0x20] sm:$0xff] }
 0x5d3   :  { %v392_v9 = vsel %vm389_vm14, %v391_v6, %v387_v7 }
 0x5d4   :  { %v394_v10 = vsel %vm1337_vm8, %v1106_v8, %v392_v9 }
 0x5d5   :  { %397 = vrot.lane.b32.xlu0 %v394_v10, %s1197_s3  ;;  %v395_v22 = vmul.f32 %v394_v10, %v345_v21 }
 0x5dd   :  { %415 = vperm.xlu0 %1081, %v413_v11  }
 0x647   :  { %v398_v12 = vpop.permute.xlu0 %397 }
 0x648   :  { %v400_v17 = vmul.f32 %v398_v12, %v394_v10 }
 0x64a   :  { %402 = vrot.lane.b32.xlu1 %v400_v17, %s1198_s28 }
 0x64f   :  { %v416_v29 = vpop.permute.xlu0 %415 }
 0x650   :  { %vm417_vm3 = vcmp.eq.s32.totalorder %v416_v29, 1 }
 0x652   :  { %46 = vperm.xlu1 %1083, %v27_v19  }
 0x6bc   :  { %v403_v23 = vpop.permute.xlu1 %402 }
 0x6bd   :  { %v405_v24 = vadd.f32 %v403_v23, %v395_v22 }
 0x6bf   :  { %1107 = vtanh.f32 %v405_v24  ;;  %v419_v54 = vsel %vm417_vm3, %v405_v24, %v345_v21 }
 0x6c4   :  { %v47_v25 = vpop.permute.xlu1 %46 }
 0x6c5   :  { %v1108_v26 = vpop.eup %1107  ;;  %vm69_vm2 = vcmp.eq.s32.totalorder %v47_v25, %v1306_v18 }
 0x6c6   :  { %v1015_v27 = vsel %vm69_vm2, 1.0, %v1196_v20  ;;  %408 = vrot.lane.b32.xlu2 %v1108_v26, %s1197_s3 }
 0x6c7   :  { %1025 = vmatmul.msk.f32.gmra.mxu0 %vm104_vm0, %v1015_v27 }
 0x720   :  { %v409_v30 = vpop.permute.xlu2 %408 }
 0x721   :  { %v411_v31 = vmul.f32 %v409_v30, %v394_v10  ;;  %v561_v30 = vsel %vm560_vm1, 1, %v1195_v1 }
 0x723   :  { %v418_v32 = vsel %vm417_vm3, %v411_v31, %v1412_v47 }
 0x724   :  { %423 = vrot.lane.b32.xlu2 %v418_v32, %s1198_s28 }
 0x744   :  { %v161_v34 = vpop.f32.mrf.mxu0 }
 0x77e   :  { %v424_v33 = vpop.permute.xlu2 %423 }
 0x77f   :  { %1037 = vmatmul.msk.f32.vlgmr.msra.gmra.mxu1 %vm201_vm15, %v424_v33 }
 0x780   :  { %883 = vmatpush.msra.mxu1 %v1277_v13 }
 0x782   :  { %884 = vmatpush.msra.mxu1 %v1282_v14 }
 0x784   :  { %885 = vmatpush.msra.mxu1 %v1289_v15 }
 0x786   :  { %886 = vmatpush.msra.mxu1 %v1300_v16 }
 0x7fc   :  { %v444_v35 = vpop.f32.mrf.mxu1 }
 0x7fd   :  { %v447_v36 = vadd.f32 %v444_v35, %v161_v34 }
 0x7ff   :  { %v1038_v37 = vmul.f32 -1.442695, %v447_v36 }
 0x801   :  { %1109 = vpow2.f32 %v1038_v37 }
 0x807   :  { %v1110_v38 = vpop.eup %1109 }
 0x808   :  { %v452_v39 = vadd.f32 1.0, %v1110_v38 }
 0x80a   :  { %1111 = vrcp.f32 %v452_v39  ;;  %v464_v44 = vand.u32 2147483648, %v452_v39  ;;  %v462_v14 = vand.u32 2147483647, %v452_v39  ;;  %vm458_vm5 = vweird.f32 %v452_v39 }
 0x80b   :  { %1113 = vtanh.f32 %v447_v36 }
 0x80c   :  { %v465_v15 = vor.u32 1.1754944e-38, %v464_v44  ;;  %vm463_vm7 = vcmp.eq.f32.partialorder %v462_v14, 8.507059e+37 }
 0x810   :  { %v1112_v40 = vpop.eup %1111 }
 0x811   :  { %v454_v42 = vmul.f32 %v1112_v40, %v452_v39  ;;  %vm459_vm4 = vweird.f32 %v1112_v40  ;;  %v1114_v46 = vpop.eup %1113 }
 0x812   :  { %vm460_vm6 = vmor %vm458_vm5, %vm459_vm4 }
 0x813   :  { %v455_v43 = vsub.f32 1.0, %v454_v42 }
 0x815   :  { %v456_v13 = vmul.f32 %v1112_v40, %v455_v43 }
 0x817   :  { %v457_v45 = vadd.f32 %v1112_v40, %v456_v13 }
 0x819   :  { %v461_v16 = vsel %vm460_vm6, %v1112_v40, %v457_v45 }
 0x81a   :  { %v466_v47 = vsel %vm463_vm7, %v465_v15, %v461_v16  ;;  %vm634_vm7 = vcmp.gt.s32.totalorder %v1354_v55, 5 }
 0x81b   :  { %v468_v48 = vsel %vm1337_vm8, %v1114_v46, %v466_v47 }
 0x81c   :  { %471 = vrot.lane.b32.xlu0 %v468_v48, %s1197_s3  ;;  %v469_v56 = vmul.f32 %v468_v48, %v419_v54 }
 0x824   :  { %489 = vperm.xlu0 %1081, %v487_v49  }
 0x88e   :  { %v472_v50 = vpop.permute.xlu0 %471 }
 0x88f   :  { %v474_v53 = vmul.f32 %v472_v50, %v468_v48 }
 0x891   :  { %476 = vrot.lane.b32.xlu1 %v474_v53, %s1198_s28 }
 0x896   :  { %v490_v61 = vpop.permute.xlu0 %489 }
 0x897   :  { %vm491_vm10 = vcmp.eq.s32.totalorder %v490_v61, 1 }
 0x903   :  { %v477_v57 = vpop.permute.xlu1 %476 }
 0x904   :  { %v479_v58 = vadd.f32 %v477_v57, %v469_v56 }
 0x906   :  { %1115 = vtanh.f32 %v479_v58  ;;  %v493_v33 = vsel %vm491_vm10, %v479_v58, %v419_v54 }
 0x90c   :  { %v1116_v59 = vpop.eup %1115 }
 0x90d   :  { %482 = vrot.lane.b32.xlu2 %v1116_v59, %s1197_s3  ;;  %v635_v59 = vsel %vm634_vm7, 1, %v1195_v1 }
 0x915   :  { %49 = vperm.xlu2 %1082, %v28_v60  }
 0x967   :  { %v483_v62 = vpop.permute.xlu2 %482 }
 0x968   :  { %v485_v63 = vmul.f32 %v483_v62, %v468_v48 }
 0x96a   :  { %v492_v3 = vsel %vm491_vm10, %v485_v63, %v418_v32 }
 0x96b   :  { %497 = vrot.lane.b32.xlu1 %v492_v3, %s1198_s28 }
 0x96f   :  { %v50_v4 = vpop.permute.xlu2 %49 }
 0x970   :  { %vm70_vm11 = vcmp.eq.s32.totalorder %v50_v4, %v1306_v18 }
 0x971   :  { %v1016_v5 = vsel %vm70_vm11, 1.0, %v1196_v20 }
 0x972   :  { %1026 = vmatmul.msk.f32.gmra.mxu0 %vm104_vm0, %v1016_v5 }
 0x9dd   :  { %v498_v6 = vpop.permute.xlu1 %497 }
 0x9de   :  { %1039 = vmatmul.msk.f32.vlgmr.msra.gmra.mxu2 %vm201_vm15, %v498_v6 }
 0x9df   :  { %962 = vmatpush.msra.mxu2 %v940_v41 }
 0x9ef   :  { %v164_v7 = vpop.f32.mrf.mxu0 }
 0xa61   :  { %v518_v8 = vpop.f32.mrf.mxu2 }
 0xa62   :  { %v521_v9 = vadd.f32 %v518_v8, %v164_v7 }
 0xa64   :  { %v1040_v10 = vmul.f32 -1.442695, %v521_v9 }
 0xa66   :  { %1117 = vpow2.f32 %v1040_v10 }
 0xa6c   :  { %v1118_v11 = vpop.eup %1117 }
 0xa6d   :  { %v526_v12 = vadd.f32 1.0, %v1118_v11 }
 0xa6f   :  { %1119 = vrcp.f32 %v526_v12  ;;  %v538_v18 = vand.u32 2147483648, %v526_v12  ;;  %v536_v20 = vand.u32 2147483647, %v526_v12  ;;  %vm532_vm0 = vweird.f32 %v526_v12 }
 0xa70   :  { %1121 = vtanh.f32 %v521_v9 }
 0xa71   :  { %v539_v24 = vor.u32 1.1754944e-38, %v538_v18  ;;  %vm537_vm14 = vcmp.eq.f32.partialorder %v536_v20, 8.507059e+37 }
 0xa75   :  { %v1120_v17 = vpop.eup %1119 }
 0xa76   :  { %v528_v19 = vmul.f32 %v1120_v17, %v526_v12  ;;  %vm533_vm12 = vweird.f32 %v1120_v17  ;;  %v1122_v26 = vpop.eup %1121 }
 0xa77   :  { %vm534_vm13 = vmor %vm532_vm0, %vm533_vm12 }
 0xa78   :  { %v529_v21 = vsub.f32 1.0, %v528_v19 }
 0xa7a   :  { %v530_v22 = vmul.f32 %v1120_v17, %v529_v21 }
 0xa7c   :  { %v531_v23 = vadd.f32 %v1120_v17, %v530_v22 }
 0xa7e   :  { %v535_v25 = vsel %vm534_vm13, %v1120_v17, %v531_v23  ;;  %vm708_vm13 = vcmp.gt.s32.totalorder %v1354_v55, 6 }
 0xa7f   :  { %v540_v27 = vsel %vm537_vm14, %v539_v24, %v535_v25 }
 0xa80   :  { %v542_v29 = vsel %vm1337_vm8, %v1122_v26, %v540_v27 }
 0xa81   :  { %545 = vrot.lane.b32.xlu0 %v542_v29, %s1197_s3  ;;  %v543_v34 = vmul.f32 %v542_v29, %v493_v33 }
 0xa89   :  { %563 = vperm.xlu0 %1081, %v561_v30  }
 0xaf3   :  { %v546_v31 = vpop.permute.xlu0 %545 }
 0xaf4   :  { %v548_v32 = vmul.f32 %v546_v31, %v542_v29 }
 0xaf6   :  { %550 = vrot.lane.b32.xlu1 %v548_v32, %s1198_s28  ;;  %v709_v32 = vsel %vm708_vm13, 1, %v1195_v1 }
 0xafb   :  { %v564_v38 = vpop.permute.xlu0 %563 }
 0xafc   :  { %vm565_vm2 = vcmp.eq.s32.totalorder %v564_v38, 1 }
 0xb68   :  { %v551_v35 = vpop.permute.xlu1 %550 }
 0xb69   :  { %v553_v36 = vadd.f32 %v551_v35, %v543_v34 }
 0xb6b   :  { %1123 = vtanh.f32 %v553_v36  ;;  %v567_v62 = vsel %vm565_vm2, %v553_v36, %v493_v33 }
 0xb71   :  { %v1124_v37 = vpop.eup %1123 }
 0xb72   :  { %556 = vrot.lane.b32.xlu2 %v1124_v37, %s1197_s3 }
 0xbcc   :  { %v557_v39 = vpop.permute.xlu2 %556 }
 0xbcd   :  { %v559_v40 = vmul.f32 %v557_v39, %v542_v29 }
 0xbcf   :  { %v566_v42 = vsel %vm565_vm2, %v559_v40, %v492_v3 }
 0xbd0   :  { %571 = vrot.lane.b32.xlu1 %v566_v42, %s1198_s28 }
 0xc42   :  { %v572_v43 = vpop.permute.xlu1 %571 }
 0xc43   :  { %1041 = vmatmul.msk.f32.vlgmr.msra.gmra.mxu3 %vm201_vm15, %v572_v43 }
 0xcc6   :  { %v592_v44 = vpop.f32.mrf.mxu3 }
 0xcc7   :  { %v595_v13 = vadd.f32 %v592_v44, %v1333_v28 }
 0xcc9   :  { %v1042_v14 = vmul.f32 -1.442695, %v595_v13 }
 0xccb   :  { %1125 = vpow2.f32 %v1042_v14 }
 0xcd1   :  { %v1126_v45 = vpop.eup %1125 }
 0xcd2   :  { %v600_v15 = vadd.f32 1.0, %v1126_v45 }
 0xcd4   :  { %1127 = vrcp.f32 %v600_v15  ;;  %v612_v48 = vand.u32 2147483648, %v600_v15  ;;  %v610_v50 = vand.u32 2147483647, %v600_v15  ;;  %vm606_vm4 = vweird.f32 %v600_v15 }
 0xcd5   :  { %1129 = vtanh.f32 %v595_v13 }
 0xcd6   :  { %v613_v54 = vor.u32 1.1754944e-38, %v612_v48  ;;  %vm611_vm6 = vcmp.eq.f32.partialorder %v610_v50, 8.507059e+37 }
 0xcda   :  { %v1128_v16 = vpop.eup %1127 }
 0xcdb   :  { %v602_v46 = vmul.f32 %v1128_v16, %v600_v15  ;;  %vm607_vm3 = vweird.f32 %v1128_v16  ;;  %v1130_v28 = vpop.eup %1129 }
 0xcdc   :  { %vm608_vm5 = vmor %vm606_vm4, %vm607_vm3 }
 0xcdd   :  { %v603_v47 = vsub.f32 1.0, %v602_v46 }
 0xcdf   :  { %v604_v49 = vmul.f32 %v1128_v16, %v603_v47 }
 0xce1   :  { %v605_v53 = vadd.f32 %v1128_v16, %v604_v49 }
 0xce3   :  { %v609_v56 = vsel %vm608_vm5, %v1128_v16, %v605_v53  ;;  %vm782_vm5 = vcmp.gt.s32.totalorder %v1354_v55, 7 }
 0xce4   :  { %v614_v57 = vsel %vm611_vm6, %v613_v54, %v609_v56 }
 0xce5   :  { %v616_v58 = vsel %vm1337_vm8, %v1130_v28, %v614_v57 }
 0xce6   :  { %619 = vrot.lane.b32.xlu2 %v616_v58, %s1197_s3  ;;  %v617_v63 = vmul.f32 %v616_v58, %v567_v62 }
 0xcee   :  { %637 = vperm.xlu2 %1082, %v635_v59  }
 0xd40   :  { %v620_v60 = vpop.permute.xlu2 %619 }
 0xd41   :  { %v622_v61 = vmul.f32 %v620_v60, %v616_v58  ;;  %v783_v60 = vsel %vm782_vm5, 1, %v1195_v1 }
 0xd43   :  { %624 = vrot.lane.b32.xlu0 %v622_v61, %s1198_s28 }
 0xd48   :  { %v638_v6 = vpop.permute.xlu2 %637 }
 0xd49   :  { %vm639_vm9 = vcmp.eq.s32.totalorder %v638_v6, 1 }
 0xdb5   :  { %v625_v3 = vpop.permute.xlu0 %624 }
 0xdb6   :  { %v627_v4 = vadd.f32 %v625_v3, %v617_v63 }
 0xdb8   :  { %1131 = vtanh.f32 %v627_v4  ;;  %v641_v35 = vsel %vm639_vm9, %v627_v4, %v567_v62 }
 0xdbe   :  { %v1132_v5 = vpop.eup %1131 }
 0xdbf   :  { %630 = vrot.lane.b32.xlu1 %v1132_v5, %s1197_s3 }
 0xe31   :  { %v631_v7 = vpop.permute.xlu1 %630 }
 0xe32   :  { %v633_v8 = vmul.f32 %v631_v7, %v616_v58 }
 0xe34   :  { %v640_v9 = vsel %vm639_vm9, %v633_v8, %v566_v42 }
 0xe35   :  { %645 = vrot.lane.b32.xlu0 %v640_v9, %s1198_s28 }
 0xea7   :  { %v646_v10 = vpop.permute.xlu0 %645 }
 0xea8   :  { %1043 = vmatmul.msk.f32.vlgmr.msrb.gmra.mxu1 %vm201_vm15, %v646_v10 }
 0xf25   :  { %v666_v11 = vpop.f32.mrf.mxu1 }
 0xf26   :  { %v669_v12 = vadd.f32 %v666_v11, %v1372_v0 }
 0xf28   :  { %v1044_v17 = vmul.f32 -1.442695, %v669_v12 }
 0xf2a   :  { %1133 = vpow2.f32 %v1044_v17 }
 0xf30   :  { %v1134_v19 = vpop.eup %1133 }
 0xf31   :  { %v674_v21 = vadd.f32 1.0, %v1134_v19 }
 0xf33   :  { %1135 = vrcp.f32 %v674_v21  ;;  %v686_v23 = vand.u32 2147483648, %v674_v21  ;;  %v684_v25 = vand.u32 2147483647, %v674_v21  ;;  %vm680_vm11 = vweird.f32 %v674_v21 }
 0xf34   :  { %1137 = vtanh.f32 %v669_v12 }
 0xf35   :  { %v687_v27 = vor.u32 1.1754944e-38, %v686_v23  ;;  %vm685_vm0 = vcmp.eq.f32.partialorder %v684_v25, 8.507059e+37 }
 0xf39   :  { %v1136_v18 = vpop.eup %1135 }
 0xf3a   :  { %v676_v22 = vmul.f32 %v1136_v18, %v674_v21  ;;  %vm681_vm10 = vweird.f32 %v1136_v18  ;;  %v1138_v0 = vpop.eup %1137 }
 0xf3b   :  { %vm682_vm12 = vmor %vm680_vm11, %vm681_vm10 }
 0xf3c   :  { %v677_v20 = vsub.f32 1.0, %v676_v22 }
 0xf3e   :  { %v678_v24 = vmul.f32 %v1136_v18, %v677_v20 }
 0xf40   :  { %v679_v26 = vadd.f32 %v1136_v18, %v678_v24 }
 0xf42   :  { %v683_v29 = vsel %vm682_vm12, %v1136_v18, %v679_v26  ;;  %vm856_vm12 = vcmp.gt.s32.totalorder %v1354_v55, 8 }
 0xf43   :  { %v688_v30 = vsel %vm685_vm0, %v687_v27, %v683_v29 }
 0xf44   :  { %v690_v31 = vsel %vm1337_vm8, %v1138_v0, %v688_v30 }
 0xf45   :  { %693 = vrot.lane.b32.xlu1 %v690_v31, %s1197_s3  ;;  %v691_v36 = vmul.f32 %v690_v31, %v641_v35 }
 0xf4d   :  { %711 = vperm.xlu1 %1083, %v709_v32   ;;  %v857_v32 = vsel %vm856_vm12, 1, %v1195_v1 }
 0xfb7   :  { %v694_v33 = vpop.permute.xlu1 %693 }
 0xfb8   :  { %v696_v34 = vmul.f32 %v694_v33, %v690_v31 }
 0xfba   :  { %698 = vrot.lane.b32.xlu2 %v696_v34, %s1198_s28 }
 0xfbf   :  { %v712_v40 = vpop.permute.xlu1 %711 }
 0xfc0   :  { %vm713_vm14 = vcmp.eq.s32.totalorder %v712_v40, 1 }
0x1014   :  { %v699_v37 = vpop.permute.xlu2 %698 }
0x1015   :  { %v701_v38 = vadd.f32 %v699_v37, %v691_v36 }
0x1017   :  { %1139 = vtanh.f32 %v701_v38  ;;  %v715_v63 = vsel %vm713_vm14, %v701_v38, %v641_v35 }
0x101d   :  { %v1140_v39 = vpop.eup %1139 }
0x101e   :  { %704 = vrot.lane.b32.xlu0 %v1140_v39, %s1197_s3 }
0x1090   :  { %v705_v42 = vpop.permute.xlu0 %704 }
0x1091   :  { %v707_v43 = vmul.f32 %v705_v42, %v690_v31 }
0x1093   :  { %v714_v44 = vsel %vm713_vm14, %v707_v43, %v640_v9 }
0x1094   :  { %719 = vrot.lane.b32.xlu2 %v714_v44, %s1198_s28 }
0x10ee   :  { %v720_v13 = vpop.permute.xlu2 %719 }
0x10ef   :  { %1045 = vmatmul.msk.f32.vlgmr.msrb.gmra.mxu2 %vm201_vm15, %v720_v13 }
0x1172   :  { %v740_v14 = vpop.f32.mrf.mxu2 }
0x1173   :  { %v743_v45 = vadd.f32 %v740_v14, %v1374_v2 }
0x1175   :  { %v1046_v15 = vmul.f32 -1.442695, %v743_v45 }
0x1177   :  { %1141 = vpow2.f32 %v1046_v15 }
0x117d   :  { %v1142_v16 = vpop.eup %1141 }
0x117e   :  { %v748_v46 = vadd.f32 1.0, %v1142_v16 }
0x1180   :  { %1143 = vrcp.f32 %v748_v46  ;;  %v760_v50 = vand.u32 2147483648, %v748_v46  ;;  %v758_v54 = vand.u32 2147483647, %v748_v46  ;;  %vm754_vm2 = vweird.f32 %v748_v46 }
0x1181   :  { %1145 = vtanh.f32 %v743_v45 }
0x1182   :  { %v761_v28 = vor.u32 1.1754944e-38, %v760_v50  ;;  %vm759_vm4 = vcmp.eq.f32.partialorder %v758_v54, 8.507059e+37 }
0x1186   :  { %v1144_v47 = vpop.eup %1143 }
0x1187   :  { %v750_v48 = vmul.f32 %v1144_v47, %v748_v46  ;;  %vm755_vm1 = vweird.f32 %v1144_v47  ;;  %v1146_v2 = vpop.eup %1145 }
0x1188   :  { %vm756_vm3 = vmor %vm754_vm2, %vm755_vm1 }
0x1189   :  { %v751_v49 = vsub.f32 1.0, %v750_v48 }
0x118b   :  { %v752_v53 = vmul.f32 %v1144_v47, %v751_v49 }
0x118d   :  { %v753_v56 = vadd.f32 %v1144_v47, %v752_v53 }
0x118f   :  { %v757_v57 = vsel %vm756_vm3, %v1144_v47, %v753_v56  ;;  %vm930_vm3 = vcmp.gt.s32.totalorder %v1354_v55, 9  ;;  %v938_v55 = vld [vmem:[%s1564_s4 + $0x8] sm:$0xff] }
0x1190   :  { %v762_v58 = vsel %vm759_vm4, %v761_v28, %v757_v57  ;;  %vm970_vm4 = vcmask 64512  }
0x1191   :  { %v764_v59 = vsel %vm1337_vm8, %v1146_v2, %v762_v58 }
0x1192   :  { %767 = vrot.lane.b32.xlu0 %v764_v59, %s1197_s3  ;;  %v765_v3 = vmul.f32 %v764_v59, %v715_v63 }
0x119a   :  { %785 = vperm.xlu0 %1081, %v783_v60  }
0x1204   :  { %v768_v61 = vpop.permute.xlu0 %767 }
0x1205   :  { %v770_v62 = vmul.f32 %v768_v61, %v764_v59 }
0x1207   :  { %772 = vrot.lane.b32.xlu1 %v770_v62, %s1198_s28 }
0x120c   :  { %v786_v7 = vpop.permute.xlu0 %785 }
0x120d   :  { %vm787_vm6 = vcmp.eq.s32.totalorder %v786_v7, 1 }
0x1279   :  { %v773_v4 = vpop.permute.xlu1 %772 }
0x127a   :  { %v775_v5 = vadd.f32 %v773_v4, %v765_v3 }
0x127c   :  { %1147 = vtanh.f32 %v775_v5  ;;  %v789_v35 = vsel %vm787_vm6, %v775_v5, %v715_v63 }
0x1282   :  { %v1148_v6 = vpop.eup %1147 }
0x1283   :  { %778 = vrot.lane.b32.xlu2 %v1148_v6, %s1197_s3  ;;  %v937_v6 = vld [vmem:[%s1564_s4] sm:$0xff] }
0x12dd   :  { %v779_v8 = vpop.permute.xlu2 %778 }
0x12de   :  { %v781_v9 = vmul.f32 %v779_v8, %v764_v59  ;;  %v931_v59 = vsel %vm930_vm3, 1, %v1195_v1  ;;  %v939_v1 = vld [vmem:[%s1564_s4 + $0x10] sm:$0xff]  ;;  %s1199_s4 = smov [#allocation3]  }
0x12df   :  { %963 = vmatpush.msra.mxu2 %v939_v1 }
0x12e0   :  { %v788_v10 = vsel %vm787_vm6, %v781_v9, %v714_v44 }
0x12e1   :  { %793 = vrot.lane.b32.xlu1 %v788_v10, %s1198_s28  ;;  %964 = vmatpush.msra.mxu2 %v938_v55 }
0x12e3   :  { %965 = vmatpush.msra.mxu2 %v937_v6 }
0x1353   :  { %v794_v11 = vpop.permute.xlu1 %793 }
0x1354   :  { %1047 = vmatmul.msk.f32.vlgmr.msrb.gmra.mxu3 %vm201_vm15, %v794_v11 }
0x13d7   :  { %v814_v12 = vpop.f32.mrf.mxu3 }
0x13d8   :  { %v817_v17 = vadd.f32 %v814_v12, %v1424_v51  ;;  %v1084_v12 = vld [vmem:[%s1565_s5] ss:$0 sm:$0xff]  ;;  %s1001_s5 = sshll.u32 %s1199_s4, 4  ;;  %s1002_s5 = int_to_ptr.vmem [resolvable:$true] %s1001_s5 }
0x13da   :  { %v1048_v19 = vmul.f32 -1.442695, %v817_v17 }
0x13dc   :  { %1149 = vpow2.f32 %v1048_v19 }
0x13e2   :  { %v1150_v21 = vpop.eup %1149 }
0x13e3   :  { %v822_v18 = vadd.f32 1.0, %v1150_v21 }
0x13e5   :  { %1151 = vrcp.f32 %v822_v18  ;;  %v834_v24 = vand.u32 2147483648, %v822_v18  ;;  %v832_v26 = vand.u32 2147483647, %v822_v18  ;;  %vm828_vm9 = vweird.f32 %v822_v18 }
0x13e6   :  { %1153 = vtanh.f32 %v817_v17 }
0x13e7   :  { %v835_v29 = vor.u32 1.1754944e-38, %v834_v24  ;;  %vm833_vm11 = vcmp.eq.f32.partialorder %v832_v26, 8.507059e+37 }
0x13eb   :  { %v1152_v22 = vpop.eup %1151 }
0x13ec   :  { %v824_v20 = vmul.f32 %v1152_v22, %v822_v18  ;;  %vm829_vm7 = vweird.f32 %v1152_v22  ;;  %v1154_v51 = vpop.eup %1153 }
0x13ed   :  { %vm830_vm10 = vmor %vm828_vm9, %vm829_vm7 }
0x13ee   :  { %v825_v23 = vsub.f32 1.0, %v824_v20 }
0x13f0   :  { %v826_v25 = vmul.f32 %v1152_v22, %v825_v23 }
0x13f2   :  { %v827_v27 = vadd.f32 %v1152_v22, %v826_v25 }
0x13f4   :  { %v831_v0 = vsel %vm830_vm10, %v1152_v22, %v827_v27 }
0x13f5   :  { %v836_v30 = vsel %vm833_vm11, %v835_v29, %v831_v0 }
0x13f6   :  { %v838_v31 = vsel %vm1337_vm8, %v1154_v51, %v836_v30 }
0x13f7   :  { %841 = vrot.lane.b32.xlu2 %v838_v31, %s1197_s3  ;;  %v839_v36 = vmul.f32 %v838_v31, %v789_v35 }
0x13ff   :  { %859 = vperm.xlu2 %1082, %v857_v32  }
0x1451   :  { %v842_v33 = vpop.permute.xlu2 %841 }
0x1452   :  { %v844_v34 = vmul.f32 %v842_v33, %v838_v31 }
0x1454   :  { %846 = vrot.lane.b32.xlu0 %v844_v34, %s1198_s28 }
0x1459   :  { %v860_v40 = vpop.permute.xlu2 %859 }
0x145a   :  { %vm861_vm0 = vcmp.eq.s32.totalorder %v860_v40, 1 }
0x14c6   :  { %v847_v37 = vpop.permute.xlu0 %846 }
0x14c7   :  { %v849_v38 = vadd.f32 %v847_v37, %v839_v36 }
0x14c9   :  { %1155 = vtanh.f32 %v849_v38  ;;  %v863_v62 = vsel %vm861_vm0, %v849_v38, %v789_v35 }
0x14cf   :  { %v1156_v39 = vpop.eup %1155 }
0x14d0   :  { %852 = vrot.lane.b32.xlu1 %v1156_v39, %s1197_s3 }
0x1542   :  { %v853_v42 = vpop.permute.xlu1 %852 }
0x1543   :  { %v855_v43 = vmul.f32 %v853_v42, %v838_v31 }
0x1545   :  { %v862_v44 = vsel %vm861_vm0, %v855_v43, %v788_v10 }
0x1546   :  { %867 = vrot.lane.b32.xlu0 %v862_v44, %s1198_s28 }
0x15b8   :  { %v868_v13 = vpop.permute.xlu0 %867 }
0x15b9   :  { %1049 = vmatmul.msk.f32.vlgmr.msra.gmra.mxu1 %vm201_vm15, %v868_v13 }
0x1636   :  { %v888_v14 = vpop.f32.mrf.mxu1 }
0x1637   :  { %v891_v45 = vadd.f32 %v888_v14, %v1426_v52 }
0x1639   :  { %v1050_v15 = vmul.f32 -1.442695, %v891_v45 }
0x163b   :  { %1157 = vpow2.f32 %v1050_v15 }
0x1641   :  { %v1158_v16 = vpop.eup %1157 }
0x1642   :  { %v896_v46 = vadd.f32 1.0, %v1158_v16 }
0x1644   :  { %1159 = vrcp.f32 %v896_v46  ;;  %v908_v50 = vand.u32 2147483648, %v896_v46  ;;  %v906_v54 = vand.u32 2147483647, %v896_v46  ;;  %vm902_vm14 = vweird.f32 %v896_v46 }
0x1645   :  { %1161 = vtanh.f32 %v891_v45 }
0x1646   :  { %v909_v28 = vor.u32 1.1754944e-38, %v908_v50  ;;  %vm907_vm2 = vcmp.eq.f32.partialorder %v906_v54, 8.507059e+37 }
0x164a   :  { %v1160_v47 = vpop.eup %1159 }
0x164b   :  { %v898_v48 = vmul.f32 %v1160_v47, %v896_v46  ;;  %vm903_vm13 = vweird.f32 %v1160_v47  ;;  %v1162_v52 = vpop.eup %1161 }
0x164c   :  { %vm904_vm1 = vmor %vm902_vm14, %vm903_vm13 }
0x164d   :  { %v899_v49 = vsub.f32 1.0, %v898_v48 }
0x164f   :  { %v900_v53 = vmul.f32 %v1160_v47, %v899_v49 }
0x1651   :  { %v901_v56 = vadd.f32 %v1160_v47, %v900_v53 }
0x1653   :  { %v905_v57 = vsel %vm904_vm1, %v1160_v47, %v901_v56 }
0x1654   :  { %v910_v2 = vsel %vm907_vm2, %v909_v28, %v905_v57 }
0x1655   :  { %v912_v58 = vsel %vm1337_vm8, %v1162_v52, %v910_v2 }
0x1656   :  { %915 = vrot.lane.b32.xlu1 %v912_v58, %s1197_s3  ;;  %v913_v63 = vmul.f32 %v912_v58, %v863_v62 }
0x165e   :  { %933 = vperm.xlu1 %1083, %v931_v59  }
0x16c8   :  { %v916_v60 = vpop.permute.xlu1 %915 }
0x16c9   :  { %v918_v61 = vmul.f32 %v916_v60, %v912_v58 }
0x16cb   :  { %920 = vrot.lane.b32.xlu2 %v918_v61, %s1198_s28 }
0x16d0   :  { %v934_v7 = vpop.permute.xlu1 %933 }
0x16d1   :  { %vm935_vm8 = vcmp.eq.s32.totalorder %v934_v7, 1 }
0x1725   :  { %v921_v3 = vpop.permute.xlu2 %920 }
0x1726   :  { %v923_v4 = vadd.f32 %v921_v3, %v913_v63 }
0x1728   :  { %1163 = vtanh.f32 %v923_v4 }
0x172e   :  { %v1164_v5 = vpop.eup %1163 }
0x172f   :  { %926 = vrot.lane.b32.xlu0 %v1164_v5, %s1197_s3  ;;  %s1003_s3 = sshll.u32 %s1566_s6, 4  ;;  %s1004_s3 = int_to_ptr.hbm [resolvable:$true] %s1003_s3 }
0x17a1   :  { %v927_v8 = vpop.permute.xlu0 %926 }
0x17a2   :  { %v929_v9 = vmul.f32 %v927_v8, %v912_v58 }
0x17a4   :  { %v936_v10 = vsel %vm935_vm8, %v929_v9, %v862_v44 }
0x17a5   :  { %946 = vrot.lane.b32.xlu2 %v936_v10, %s1198_s28 }
0x17ff   :  { %v947_v11 = vpop.permute.xlu2 %946 }
0x1800   :  { %1051 = vmatmul.msk.f32.vlgmr.msra.gmra.mxu2 %vm201_vm15, %v947_v11 }
0x1883   :  { %v967_v17 = vpop.f32.mrf.mxu2 }
0x1884   :  { %v968_v19 = vadd.f32 %v1084_v12, %v967_v17 }
0x1886   :  { %v971_v21 = vsel %vm970_vm4, %v968_v19, -inf }
0x1887   :  { %972 = vmax.xlane.f32.xlu0 %v971_v21 }
0x18fa   :  { %v973_v18 = vpop.xlane.xlu0 %972 }
0x18fb   :  { %v974_v22 = vsub.f32 %v968_v19, %v973_v18 }
0x18fd   :  { %v975_v20 = vmul.f32 1.442695, %v974_v22 }
0x18ff   :  { %1165 = vpow2.f32 %v975_v20 }
0x1905   :  { %v1166_v23 = vpop.eup %1165 }
0x1906   :  { %v977_v24 = vsel %vm970_vm4, %v1166_v23, 0.0 }
0x1907   :  { %978 = vadd.xlane.f32.xlu1 %v977_v24 }
0x197a   :  { %v979_v25 = vpop.xlane.xlu1 %978 }
0x197b   :  { %1167 = vrcp.f32 %v979_v25  ;;  %v991_v0 = vand.u32 2147483648, %v979_v25  ;;  %v989_v30 = vand.u32 2147483647, %v979_v25  ;;  %vm985_vm5 = vweird.f32 %v979_v25 }
0x197d   :  { %v992_v32 = vor.u32 1.1754944e-38, %v991_v0  ;;  %vm990_vm7 = vcmp.eq.f32.partialorder %v989_v30, 8.507059e+37 }
0x1981   :  { %v1168_v26 = vpop.eup %1167 }
0x1982   :  { %v981_v27 = vmul.f32 %v1168_v26, %v979_v25  ;;  %vm986_vm15 = vweird.f32 %v1168_v26 }
0x1983   :  { %vm987_vm6 = vmor %vm985_vm5, %vm986_vm15 }
0x1984   :  { %v982_v29 = vsub.f32 1.0, %v981_v27 }
0x1986   :  { %v983_v51 = vmul.f32 %v1168_v26, %v982_v29 }
0x1988   :  { %v984_v31 = vadd.f32 %v1168_v26, %v983_v51 }
0x198a   :  { %v988_v33 = vsel %vm987_vm6, %v1168_v26, %v984_v31 }
0x198b   :  { %v993_v34 = vsel %vm990_vm7, %v992_v32, %v988_v33 }
0x198c   :  { %v994_v35 = vmul.f32 %v1166_v23, %v993_v34 }
0x198e   :  { %995 = vst.msk [vmem:[#allocation3] sm:$0xff] %vm970_vm4, %v994_v35 }
0x198f   :  { %1006 = dma.vmem_to_hbm [thread:$0]  %s1002_s5, 128, %s1004_s3, [#allocation4]  }
0x1990   :  { %1193 = dma.done.wait [#allocation4], 128  }
0x1991   :  { %1194 = vsyncadd [#allocation4], 4294967168 }
0x1992   :  { %1011 = vsyncpa [#allocation4], 1 }

</bundles_post_ra>
